<compile_context>
chip_gen: v5e
topology: v5e:2x2
jax: 0.10.0
libtpu: 0.0.40
codegen_flags: <defaults>
</compile_context>

<pallas_src>
import functools
import math

import jax
import jax.numpy as jnp
from jax.experimental import pallas as pl
from jax.experimental.pallas import tpu as pltpu

NEG_INF = -1e30   # large-negative instead of -inf: identical softmax, no 0/0 NaN risk
TILE_M = 256      # rows per grid step for M-tiled kernels
LANE = 128
_MIB = 1024 * 1024


# ---------------------------------------------------------------------------
# VMEM budget / compiler params (per-generation safe)
# ---------------------------------------------------------------------------

def _vmem_big_budget():
    try:
        cap = int(pltpu.get_tpu_info().vmem_capacity_bytes)
        return int(min(0.75 * cap, 100 * _MIB))   # v7x: 48 MiB, v6e/v5e: 96-100 MiB
    except Exception:
        return 48 * _MIB                           # safe on every generation

_VMEM_BIG = _vmem_big_budget()
_VMEM_SMALL = min(32 * _MIB, _VMEM_BIG)


def _cp(n_grid_dims, big=False):
    return pltpu.CompilerParams(
        dimension_semantics=("parallel",) * n_grid_dims,
        vmem_limit_bytes=_VMEM_BIG if big else _VMEM_SMALL,
    )


def _const(shape):
    """BlockSpec for a block that never changes across grid steps (weights/biases/LN params).

    Single-buffered (Buffered(1)) so the resident weight is not double-buffered in VMEM.
    Falls back to a plain constant-index BlockSpec if pipeline_mode is unavailable.
    """
    idx = lambda *_: (0,) * len(shape)
    try:
        return pl.BlockSpec(shape, idx, pipeline_mode=pl.Buffered(1))
    except Exception:
        return pl.BlockSpec(shape, idx)


def _row_grid(M):
    """Row tile: full array if small, else TILE_M tiles; ragged tail handled by Pallas."""
    tm = M if M <= TILE_M else TILE_M
    return tm, pl.cdiv(M, tm)


# ---------------------------------------------------------------------------
# Pallas kernels
# ---------------------------------------------------------------------------

def _ln(x_f32, g, b):
    mu = jnp.mean(x_f32, axis=-1, keepdims=True)
    xc = x_f32 - mu
    var = jnp.mean(xc * xc, axis=-1, keepdims=True)
    return xc * jax.lax.rsqrt(var + 1e-5) * g + b     # nn.LayerNorm default eps


def _linear_kernel(x_ref, w_ref, b_ref, o_ref):
    # x, w already bf16; accumulate in f32 on the MXU; f32 bias add; store bf16.
    o_ref[...] = (jnp.dot(x_ref[...], w_ref[...], preferred_element_type=jnp.float32)
                  + b_ref[...]).astype(o_ref.dtype)


def linear(x2d, w, b):
    """y = x @ W + b, M-tiled grid; bf16 weights stay single-buffered/VMEM-resident."""
    M, K = x2d.shape
    N = w.shape[1]
    tm, gm = _row_grid(M)
    return pl.pallas_call(
        _linear_kernel,
        grid=(gm,),
        in_specs=[pl.BlockSpec((tm, K), lambda i: (i, 0)),
                  _const((K, N)),
                  _const((1, N))],
        out_specs=pl.BlockSpec((tm, N), lambda i: (i, 0)),
        out_shape=jax.ShapeDtypeStruct((M, N), jnp.bfloat16),
        compiler_params=_cp(1),
    )(x2d, w, b.reshape(1, N))


def _ln_res_kernel(x_ref, r_ref, g_ref, b_ref, o_ref):
    x = x_ref[...].astype(jnp.float32) + r_ref[...].astype(jnp.float32)  # residual fused
    o_ref[...] = _ln(x, g_ref[...], b_ref[...]).astype(o_ref.dtype)


def layernorm_res(x2d, res2d, gamma, beta):
    """LayerNorm(x + residual): bf16 in/out, f32 statistics."""
    M, E = x2d.shape
    tm, gm = _row_grid(M)
    return pl.pallas_call(
        _ln_res_kernel,
        grid=(gm,),
        in_specs=[pl.BlockSpec((tm, E), lambda i: (i, 0)),
                  pl.BlockSpec((tm, E), lambda i: (i, 0)),
                  _const((1, E)),
                  _const((1, E))],
        out_specs=pl.BlockSpec((tm, E), lambda i: (i, 0)),
        out_shape=jax.ShapeDtypeStruct((M, E), jnp.bfloat16),
        compiler_params=_cp(1),
    )(x2d, res2d, gamma.reshape(1, E), beta.reshape(1, E))


def _tail_kernel(a_ref, r_ref, g1_ref, b1_ref, w1_ref, bb1_ref,
                 w2_ref, bb2_ref, g2_ref, b2_ref, o_ref):
    """Fused block tail: h = LN1(att + x); f = W2·relu(W1·h + b1) + b2; out = LN2(f + h)."""
    h = _ln(a_ref[...].astype(jnp.float32) + r_ref[...].astype(jnp.float32),
            g1_ref[...], b1_ref[...])
    f = jnp.dot(h.astype(jnp.bfloat16), w1_ref[...],
                preferred_element_type=jnp.float32) + bb1_ref[...]
    f = jnp.maximum(f, 0.0).astype(jnp.bfloat16)                        # ReLU
    f = jnp.dot(f, w2_ref[...], preferred_element_type=jnp.float32) + bb2_ref[...]
    o_ref[...] = _ln(f + h, g2_ref[...], b2_ref[...]).astype(o_ref.dtype)


def block_tail(att2d, res2d, p):
    """LN1(att + res) -> FFN -> LN2, one kernel per layer tail (saves 2 HBM round trips)."""
    M, E = att2d.shape
    F = p["w1"].shape[1]
    tm, gm = _row_grid(M)
    return pl.pallas_call(
        _tail_kernel,
        grid=(gm,),
        in_specs=[pl.BlockSpec((tm, E), lambda i: (i, 0)),
                  pl.BlockSpec((tm, E), lambda i: (i, 0)),
                  _const((1, E)), _const((1, E)),        # LN1 gamma/beta
                  _const((E, F)), _const((1, F)),        # W1, b1 (bf16 / f32)
                  _const((F, E)), _const((1, E)),        # W2, b2
                  _const((1, E)), _const((1, E))],       # LN2 gamma/beta
        out_specs=pl.BlockSpec((tm, E), lambda i: (i, 0)),
        out_shape=jax.ShapeDtypeStruct((M, E), jnp.bfloat16),
        compiler_params=_cp(1, big=True),
    )(att2d, res2d,
      p["ln1_g"].reshape(1, E), p["ln1_b"].reshape(1, E),
      p["w1"], p["b1"].reshape(1, F),
      p["w2"], p["b2"].reshape(1, E),
      p["ln2_g"].reshape(1, E), p["ln2_b"].reshape(1, E))


def _linear_softmax_kernel(x_ref, w_ref, b_ref, o_ref):
    logits = jnp.dot(x_ref[...], w_ref[...], preferred_element_type=jnp.float32) + b_ref[...]
    m = jnp.max(logits, axis=-1, keepdims=True)
    p = jnp.exp(logits - m)
    o_ref[...] = (p / jnp.sum(p, axis=-1, keepdims=True)).astype(o_ref.dtype)  # exact divide


def linear_softmax(x2d, w, b, n_valid):
    """softmax(x @ W + b): fc_out fused with the output softmax.

    The vocab is already padded (at init) to a lane multiple with -1e30 pad bias so the pad
    columns get exactly-zero probability; the padding is sliced off afterwards.
    """
    # TODO(synk): for 32k+ vocabularies, tile the vocab (N) axis with a two-pass/online
    # softmax instead of keeping (K, Vp) resident — required to fit v7x's 64 MiB VMEM.
    M, K = x2d.shape
    Vp = w.shape[1]
    tm, gm = _row_grid(M)
    out = pl.pallas_call(
        _linear_softmax_kernel,
        grid=(gm,),
        in_specs=[pl.BlockSpec((tm, K), lambda i: (i, 0)),
                  _const((K, Vp)),
                  _const((1, Vp))],
        out_specs=pl.BlockSpec((tm, Vp), lambda i: (i, 0)),
        out_shape=jax.ShapeDtypeStruct((M, Vp), jnp.float32),
        compiler_params=_cp(1, big=True),
    )(x2d, w, b.reshape(1, Vp))
    return out[:, :n_valid]


# ---- attention: head-major layout, batched-over-heads matmuls, fused output projection ----

def _attend_project(q, k, v, wo, bo, causal):
    """q,k,v: (H, L, Dh) bf16 (scale pre-folded into q); wo: (H, Dh, E) bf16; bo: (1, E) f32.

    Returns the projected attention output (Lq, E) in f32 (one lane-dense tile).
    """
    # TODO(synk): for long sequences, tile KV with an online softmax (flash-style) instead of
    # materializing the full (H, Lq, Lk) score tensor.
    H, Lq, _ = q.shape
    Lk = k.shape[1]
    s = jax.lax.dot_general(q, k, (((2,), (2,)), ((0,), (0,))),
                            preferred_element_type=jnp.float32)           # (H, Lq, Lk)
    if causal:
        rows = jax.lax.broadcasted_iota(jnp.int32, (H, Lq, Lk), 1)
        cols = jax.lax.broadcasted_iota(jnp.int32, (H, Lq, Lk), 2)
        s = jnp.where(cols <= rows, s, NEG_INF)
    m = jnp.max(s, axis=-1, keepdims=True)
    p = jnp.exp(s - m)
    inv = pl.reciprocal(jnp.sum(p, axis=-1, keepdims=True), approx=True)   # EUP, nearly free
    p = (p * inv).astype(jnp.bfloat16)
    att = jax.lax.dot_general(p, v, (((2,), (1,)), ((0,), (0,))),
                              preferred_element_type=jnp.float32)          # (H, Lq, Dh)
    # fused output projection: sum_h att[h] @ wo[h]  (no per-head lane slicing / concat)
    proj = jax.lax.dot_general(att.astype(jnp.bfloat16), wo,
                               (((2,), (1,)), ((0,), (0,))),
                               preferred_element_type=jnp.float32)         # (H, Lq, E)
    return jnp.sum(proj, axis=0) + bo                                      # (Lq, E) f32


def _self_attn_kernel(qkv_ref, wo_ref, bo_ref, o_ref, *, causal):
    q = qkv_ref[0, 0]    # (H, L, Dh) bf16, leading-dim loads (no lane slicing)
    k = qkv_ref[0, 1]
    v = qkv_ref[0, 2]
    o_ref[0] = _attend_project(q, k, v, wo_ref[...], bo_ref[...], causal).astype(o_ref.dtype)


def _cross_attn_kernel(q_ref, kv_ref, wo_ref, bo_ref, o_ref, *, causal):
    q = q_ref[0]         # (H, Lq, Dh)
    k = kv_ref[0, 0]     # (H, Lk, Dh)
    v = kv_ref[0, 1]
    o_ref[0] = _attend_project(q, k, v, wo_ref[...], bo_ref[...], causal).astype(o_ref.dtype)


def self_attention(qkv, wo_h, bo, causal):
    """qkv: (B, 3, H, L, Dh) bf16 -> (B, L, E) bf16 (output projection fused in-kernel)."""
    B, _, H, L, Dh = qkv.shape
    E = H * Dh
    kern = functools.partial(_self_attn_kernel, causal=causal)
    return pl.pallas_call(
        kern,
        grid=(B,),
        in_specs=[pl.BlockSpec((1, 3, H, L, Dh), lambda b: (b, 0, 0, 0, 0)),
                  _const((H, Dh, E)),
                  _const((1, E))],
        out_specs=pl.BlockSpec((1, L, E), lambda b: (b, 0, 0)),
        out_shape=jax.ShapeDtypeStruct((B, L, E), jnp.bfloat16),
        compiler_params=_cp(1),
    )(qkv, wo_h, bo.reshape(1, E))


def cross_attention(q, kv, wo_h, bo, causal):
    """q: (B, H, Lq, Dh), kv: (B, 2, H, Lk, Dh) -> (B, Lq, E) bf16 (out-proj fused)."""
    B, H, Lq, Dh = q.shape
    Lk = kv.shape[3]
    E = H * Dh
    kern = functools.partial(_cross_attn_kernel, causal=causal)
    return pl.pallas_call(
        kern,
        grid=(B,),
        in_specs=[pl.BlockSpec((1, H, Lq, Dh), lambda b: (b, 0, 0, 0)),
                  pl.BlockSpec((1, 2, H, Lk, Dh), lambda b: (b, 0, 0, 0, 0)),
                  _const((H, Dh, E)),
                  _const((1, E))],
        out_specs=pl.BlockSpec((1, Lq, E), lambda b: (b, 0, 0)),
        out_shape=jax.ShapeDtypeStruct((B, Lq, E), jnp.bfloat16),
        compiler_params=_cp(1),
    )(q, kv, wo_h, bo.reshape(1, E))


# ---------------------------------------------------------------------------
# Model glue (plain JAX: embedding gather, head-major reshapes, parameter plumbing)
# ---------------------------------------------------------------------------

def mha_self(x, p, heads, causal):
    B, L, E = x.shape
    Dh = E // heads
    qkv = linear(x.reshape(B * L, E), p["wqkv"], p["bqkv"])            # (B*L, 3E) bf16
    qkv = qkv.reshape(B, L, 3, heads, Dh).transpose(0, 2, 3, 1, 4)     # (B, 3, H, L, Dh)
    return self_attention(qkv, p["wo_h"], p["bo"], causal)             # (B, L, E) bf16


def mha_cross(x_q, x_kv, p, heads, causal):
    B, Lq, E = x_q.shape
    Lk = x_kv.shape[1]
    Dh = E // heads
    q = linear(x_q.reshape(B * Lq, E), p["wq"], p["bq"])               # scale folded into wq
    q = q.reshape(B, Lq, heads, Dh).transpose(0, 2, 1, 3)              # (B, H, Lq, Dh)
    kv = linear(x_kv.reshape(B * Lk, E), p["wkv"], p["bkv"])
    kv = kv.reshape(B, Lk, 2, heads, Dh).transpose(0, 2, 3, 1, 4)      # (B, 2, H, Lk, Dh)
    return cross_attention(q, kv, p["wo_h"], p["bo"], causal)


def encoder_layer(x, p, heads):
    B, L, E = x.shape
    att = mha_self(x, p["attn"], heads, causal=True)    # reference passes the causal src_mask
    out = block_tail(att.reshape(B * L, E), x.reshape(B * L, E), p)    # LN1 -> FFN -> LN2
    return out.reshape(B, L, E)


def decoder_layer(x, enc_out, p, heads):
    B, L, E = x.shape
    satt = mha_self(x, p["self_attn"], heads, causal=True)             # causal tar mask
    q = layernorm_res(satt.reshape(B * L, E), x.reshape(B * L, E),
                      p["ln0_g"], p["ln0_b"]).reshape(B, L, E)
    # the reference applies the (Ls,Ls) causal src_mask in cross-attn (valid since Ls == Lt)
    catt = mha_cross(q, enc_out, p["cross_attn"], heads, causal=True)
    out = block_tail(catt.reshape(B * L, E), q.reshape(B * L, E), p)
    return out.reshape(B, L, E)


def transformer_forward(params, src, tar, cfg):
    B, Ls = src.shape
    Lt = tar.shape[1]
    H = cfg["heads"]
    E = cfg["embed"]

    # encoder (dropout omitted: identity at inference; embedding gather left to XLA)
    x = (params["enc"]["tok_emb"][src]
         + params["enc"]["pos_emb"][jnp.arange(Ls)][None]).astype(jnp.bfloat16)
    for lp in params["enc"]["layers"]:
        x = encoder_layer(x, lp, H)
    enc_src = x

    # decoder
    y = (params["dec"]["tok_emb"][tar]
         + params["dec"]["pos_emb"][jnp.arange(Lt)][None]).astype(jnp.bfloat16)
    for lp in params["dec"]["layers"]:
        y = decoder_layer(y, enc_src, lp, H)

    # fc_out fused with softmax(dim=-1)
    probs = linear_softmax(y.reshape(B * Lt, E), params["fc_w"], params["fc_b"],
                           cfg["tar_voc"])
    return probs.reshape(B, Lt, cfg["tar_voc"])


# ---------------------------------------------------------------------------
# Deterministic parameter init (synthetic; shapes implied by __init__).
# Matmul weights are stored bf16 (pre-cast once), biases / LN params f32, the 1/sqrt(Dh)
# attention scale is folded into the Q projections, wo is stored head-major (H, Dh, E),
# and fc_out is pre-padded to a lane multiple with -1e30 pad bias.
# ---------------------------------------------------------------------------

def init_params(key, cfg):
    E = cfg["embed"]
    H = cfg["heads"]
    Dh = E // H
    F = E * cfg["for_exp"]
    scale = 1.0 / math.sqrt(Dh)
    counter = [0]

    def nk():
        counter[0] += 1
        return jax.random.fold_in(key, counter[0])

    def dense(din, dout):
        w = 0.02 * jax.random.normal(nk(), (din, dout), jnp.float32)
        return w, jnp.zeros((dout,), jnp.float32)

    def bf(w):
        return w.astype(jnp.bfloat16)

    def self_attn_params():
        wqkv, bqkv = dense(E, 3 * E)                 # fused Q/K/V projection
        wqkv = wqkv.at[:, :E].multiply(scale)        # fold 1/sqrt(Dh) into the Q projection
        bqkv = bqkv.at[:E].multiply(scale)
        wo, bo = dense(E, E)
        return {"wqkv": bf(wqkv), "bqkv": bqkv,
                "wo_h": bf(wo).reshape(H, Dh, E), "bo": bo}

    def cross_attn_params():
        wq, bq = dense(E, E)
        wq, bq = wq * scale, bq * scale              # fold scale into the Q projection
        wkv, bkv = dense(E, 2 * E)                   # fused K/V projection
        wo, bo = dense(E, E)
        return {"wq": bf(wq), "bq": bq, "wkv": bf(wkv), "bkv": bkv,
                "wo_h": bf(wo).reshape(H, Dh, E), "bo": bo}

    def ffn_ln(p):
        w1, b1 = dense(E, F)
        w2, b2 = dense(F, E)
        p["w1"], p["b1"], p["w2"], p["b2"] = bf(w1), b1, bf(w2), b2
        p["ln1_g"], p["ln1_b"] = jnp.ones((E,), jnp.float32), jnp.zeros((E,), jnp.float32)
        p["ln2_g"], p["ln2_b"] = jnp.ones((E,), jnp.float32), jnp.zeros((E,), jnp.float32)
        return p

    enc_layers = [ffn_ln({"attn": self_attn_params()}) for _ in range(cfg["num_layers"])]

    dec_layers = []
    for _ in range(cfg["num_layers"]):
        p = {"self_attn": self_attn_params(), "cross_attn": cross_attn_params()}
        p["ln0_g"], p["ln0_b"] = jnp.ones((E,), jnp.float32), jnp.zeros((E,), jnp.float32)
        dec_layers.append(ffn_ln(p))

    # fc_out pre-padded to a lane multiple (pad bias -1e30 -> exactly-zero probability)
    V = cfg["tar_voc"]
    Vp = pl.cdiv(V, LANE) * LANE
    fc_w, fc_b = dense(E, V)
    fc_w = jnp.pad(fc_w, ((0, 0), (0, Vp - V)))
    fc_b = jnp.concatenate([fc_b, jnp.full((Vp - V,), NEG_INF, jnp.float32)])

    return {
        "enc": {
            "tok_emb": bf(0.02 * jax.random.normal(nk(), (cfg["src_voc"], E), jnp.float32)),
            "pos_emb": bf(0.02 * jax.random.normal(nk(), (cfg["max_in_len"], E), jnp.float32)),
            "layers": enc_layers,
        },
        "dec": {
            "tok_emb": bf(0.02 * jax.random.normal(nk(), (cfg["tar_voc"], E), jnp.float32)),
            "pos_emb": bf(0.02 * jax.random.normal(nk(), (cfg["max_out_len"], E), jnp.float32)),
            "layers": dec_layers,
        },
        "fc_w": bf(fc_w),
        "fc_b": fc_b,
    }


if __name__ == "__main__":
    cfg = dict(
        src_voc=50, tar_voc=50,
        embed=32, heads=4, num_layers=2, for_exp=4,
        max_in_len=16, max_out_len=8,
    )
    B, Ls, Lt = 2, 5, 5   # tar_len=5 per module default; Ls==Lt so the reference's
                          # (Ls,Ls) src_mask is also valid in cross-attention.

    key = jax.random.PRNGKey(0)
    params = init_params(key, cfg)
    src = jax.random.randint(jax.random.fold_in(key, 1000), (B, Ls), 0, cfg["src_voc"], jnp.int32)
    tar = jax.random.randint(jax.random.fold_in(key, 2000), (B, Lt), 0, cfg["tar_voc"], jnp.int32)

    fwd = jax.jit(functools.partial(transformer_forward, cfg=cfg))
    out = jax.block_until_ready(fwd(params, src, tar))

    assert out.shape == (B, Lt, cfg["tar_voc"])
    # output softmax rows sum to one (computed with an exact f32 divide)
    assert bool(jnp.allclose(jnp.sum(out, axis=-1), 1.0, atol=1e-3))
    print("KERNEL_OK")
</pallas_src>

<mosaic_0001>
module attributes {stable_mosaic.version = 11 : i64} {
  func.func @_linear_kernel(%arg0: i32, %arg1: memref<10x32xbf16, #tpu.memory_space<vmem>>, %arg2: memref<32x96xbf16, #tpu.memory_space<vmem>>, %arg3: memref<1x96xf32, #tpu.memory_space<vmem>>, %arg4: memref<10x96xbf16, #tpu.memory_space<vmem>>) attributes {dimension_semantics = [#tpu.dimension_semantics<parallel>], iteration_bounds = array<i64: 1>, scalar_prefetch = 0 : i64, scratch_operands = 0 : i64, tpu.core_type = #tpu.core_type<tc>, window_params = [{transform_indices = @transform_0, window_bounds = array<i64: 10, 32>}, {pipeline_mode = #tpu.pipeline_mode<synchronous>, transform_indices = @transform_1, window_bounds = array<i64: 32, 96>}, {pipeline_mode = #tpu.pipeline_mode<synchronous>, transform_indices = @transform_2, window_bounds = array<i64: 1, 96>}, {transform_indices = @transform_3, window_bounds = array<i64: 10, 96>}]} {
    %c0 = arith.constant 0 : index
    %c0_0 = arith.constant 0 : index
    %0 = vector.load %arg1[%c0, %c0_0] : memref<10x32xbf16, #tpu.memory_space<vmem>>, vector<10x32xbf16>
    %c0_1 = arith.constant 0 : index
    %c0_2 = arith.constant 0 : index
    %1 = vector.load %arg2[%c0_1, %c0_2] : memref<32x96xbf16, #tpu.memory_space<vmem>>, vector<32x96xbf16>
    %cst = arith.constant dense<0.000000e+00> : vector<10x96xf32>
    %2 = tpu.matmul %0, %1, %cst {dimension_numbers = #tpu.dot_dimension_numbers<[1], [0], [0], [1], [0, 0, 1, 1], [], []>} : vector<10x32xbf16>, vector<32x96xbf16>, vector<10x96xf32> -> vector<10x96xf32>
    %c0_3 = arith.constant 0 : index
    %c0_4 = arith.constant 0 : index
    %3 = vector.load %arg3[%c0_3, %c0_4] : memref<1x96xf32, #tpu.memory_space<vmem>>, vector<1x96xf32>
    %4 = vector.broadcast %3 : vector<1x96xf32> to vector<10x96xf32>
    %5 = arith.addf %2, %4 : vector<10x96xf32>
    %6 = arith.truncf %5 : vector<10x96xf32> to vector<10x96xbf16>
    %c0_5 = arith.constant 0 : index
    %c0_6 = arith.constant 0 : index
    %7 = vector.load %arg4[%c0_5, %c0_6] : memref<10x96xbf16, #tpu.memory_space<vmem>>, vector<10x96xbf16>
    tpu.vector_store %arg4[%c0_5, %c0_6], %6 {strides = array<i32>} : memref<10x96xbf16, #tpu.memory_space<vmem>>, vector<10x96xbf16>,
    return
  }
  func.func @transform_0(%arg0: i32) -> (i32, i32) {
    %c0_i32 = arith.constant 0 : i32
    %c0_i32_0 = arith.constant 0 : i32
    return %arg0, %c0_i32 : i32, i32
  }
  func.func @transform_1(%arg0: i32) -> (i32, i32) {
    %c0_i32 = arith.constant 0 : i32
    %c0_i32_0 = arith.constant 0 : i32
    %c0_i32_1 = arith.constant 0 : i32
    return %c0_i32, %c0_i32_0 : i32, i32
  }
  func.func @transform_2(%arg0: i32) -> (i32, i32) {
    %c0_i32 = arith.constant 0 : i32
    %c0_i32_0 = arith.constant 0 : i32
    %c0_i32_1 = arith.constant 0 : i32
    return %c0_i32, %c0_i32_0 : i32, i32
  }
  func.func @transform_3(%arg0: i32) -> (i32, i32) {
    %c0_i32 = arith.constant 0 : i32
    %c0_i32_0 = arith.constant 0 : i32
    return %arg0, %c0_i32 : i32, i32
  }
}

module attributes {stable_mosaic.version = 11 : i64} {
  func.func @_self_attn_kernel(%arg0: i32, %arg1: memref<1x3x4x5x8xbf16, #tpu.memory_space<vmem>>, %arg2: memref<4x8x32xbf16, #tpu.memory_space<vmem>>, %arg3: memref<1x32xf32, #tpu.memory_space<vmem>>, %arg4: memref<1x5x32xbf16, #tpu.memory_space<vmem>>) attributes {dimension_semantics = [#tpu.dimension_semantics<parallel>], iteration_bounds = array<i64: 2>, scalar_prefetch = 0 : i64, scratch_operands = 0 : i64, tpu.core_type = #tpu.core_type<tc>, window_params = [{transform_indices = @transform_0, window_bounds = array<i64: 1, 3, 4, 5, 8>}, {pipeline_mode = #tpu.pipeline_mode<synchronous>, transform_indices = @transform_1, window_bounds = array<i64: 4, 8, 32>}, {pipeline_mode = #tpu.pipeline_mode<synchronous>, transform_indices = @transform_2, window_bounds = array<i64: 1, 32>}, {transform_indices = @transform_3, window_bounds = array<i64: 1, 5, 32>}]} {
    %c0 = arith.constant 0 : index
    %c0_0 = arith.constant 0 : index
    %c0_1 = arith.constant 0 : index
    %c0_2 = arith.constant 0 : index
    %c0_3 = arith.constant 0 : index
    %0 = vector.load %arg1[%c0, %c0_0, %c0_1, %c0_2, %c0_3] : memref<1x3x4x5x8xbf16, #tpu.memory_space<vmem>>, vector<1x1x4x5x8xbf16>
    %1 = vector.shape_cast %0 : vector<1x1x4x5x8xbf16> to vector<4x5x8xbf16>
    %c0_4 = arith.constant 0 : index
    %c1 = arith.constant 1 : index
    %c0_5 = arith.constant 0 : index
    %c0_6 = arith.constant 0 : index
    %c0_7 = arith.constant 0 : index
    %2 = vector.load %arg1[%c0_4, %c1, %c0_5, %c0_6, %c0_7] : memref<1x3x4x5x8xbf16, #tpu.memory_space<vmem>>, vector<1x1x4x5x8xbf16>
    %3 = vector.shape_cast %2 : vector<1x1x4x5x8xbf16> to vector<4x5x8xbf16>
    %c0_8 = arith.constant 0 : index
    %c2 = arith.constant 2 : index
    %c0_9 = arith.constant 0 : index
    %c0_10 = arith.constant 0 : index
    %c0_11 = arith.constant 0 : index
    %4 = vector.load %arg1[%c0_8, %c2, %c0_9, %c0_10, %c0_11] : memref<1x3x4x5x8xbf16, #tpu.memory_space<vmem>>, vector<1x1x4x5x8xbf16>
    %5 = vector.shape_cast %4 : vector<1x1x4x5x8xbf16> to vector<4x5x8xbf16>
    %c0_12 = arith.constant 0 : index
    %c0_13 = arith.constant 0 : index
    %c0_14 = arith.constant 0 : index
    %6 = vector.load %arg2[%c0_12, %c0_13, %c0_14] : memref<4x8x32xbf16, #tpu.memory_space<vmem>>, vector<4x8x32xbf16>
    %c0_15 = arith.constant 0 : index
    %c0_16 = arith.constant 0 : index
    %7 = vector.load %arg3[%c0_15, %c0_16] : memref<1x32xf32, #tpu.memory_space<vmem>>, vector<1x32xf32>
    %cst = arith.constant dense<0.000000e+00> : vector<4x5x5xf32>
    %8 = tpu.matmul %1, %3, %cst {dimension_numbers = #tpu.dot_dimension_numbers<[2], [2], [1], [1], [0, 0, 0, 1, 1, 1], [0], [0]>} : vector<4x5x8xbf16>, vector<4x5x8xbf16>, vector<4x5x5xf32> -> vector<4x5x5xf32>
    %9 = tpu.iota {dimensions = array<i32: 1>} : vector<4x5x5xi32>
    %10 = tpu.iota {dimensions = array<i32: 2>} : vector<4x5x5xi32>
    %11 = arith.cmpi sle, %10, %9 : vector<4x5x5xi32>
    %cst_17 = arith.constant -1.000000e+30 : f32
    %12 = vector.broadcast %cst_17 : f32 to vector<4x5x5xf32>
    %13 = arith.select %11, %8, %12 : vector<4x5x5xi1>, vector<4x5x5xf32>
    %cst_18 = arith.constant dense<0xFF800000> : vector<4x5xf32>
    %14 = vector.multi_reduction <maximumf>, %13, %cst_18 [2] : vector<4x5x5xf32> to vector<4x5xf32>
    %15 = vector.shape_cast %14 : vector<4x5xf32> to vector<4x5x1xf32>
    %16 = vector.broadcast %15 : vector<4x5x1xf32> to vector<4x5x5xf32>
    %17 = arith.subf %13, %16 : vector<4x5x5xf32>
    %18 = math.exp %17 : vector<4x5x5xf32>
    %cst_19 = arith.constant dense<0.000000e+00> : vector<4x5xf32>
    %19 = vector.multi_reduction <add>, %18, %cst_19 [2] : vector<4x5x5xf32> to vector<4x5xf32>
    %20 = vector.shape_cast %19 : vector<4x5xf32> to vector<4x5x1xf32>
    %21 = tpu.reciprocal %20 {approx = true} : vector<4x5x1xf32> -> vector<4x5x1xf32>
    %22 = vector.broadcast %21 : vector<4x5x1xf32> to vector<4x5x5xf32>
    %23 = arith.mulf %18, %22 : vector<4x5x5xf32>
    %24 = arith.truncf %23 : vector<4x5x5xf32> to vector<4x5x5xbf16>
    %cst_20 = arith.constant dense<0.000000e+00> : vector<4x5x8xf32>
    %25 = tpu.matmul %24, %5, %cst_20 {dimension_numbers = #tpu.dot_dimension_numbers<[2], [1], [1], [2], [0, 0, 0, 1, 1, 2], [0], [0]>} : vector<4x5x5xbf16>, vector<4x5x8xbf16>, vector<4x5x8xf32> -> vector<4x5x8xf32>
    %26 = arith.truncf %25 : vector<4x5x8xf32> to vector<4x5x8xbf16>
    %cst_21 = arith.constant dense<0.000000e+00> : vector<4x5x32xf32>
    %27 = tpu.matmul %26, %6, %cst_21 {dimension_numbers = #tpu.dot_dimension_numbers<[2], [1], [1], [2], [0, 0, 0, 1, 1, 2], [0], [0]>} : vector<4x5x8xbf16>, vector<4x8x32xbf16>, vector<4x5x32xf32> -> vector<4x5x32xf32>
    %cst_22 = arith.constant dense<0.000000e+00> : vector<5x32xf32>
    %28 = vector.multi_reduction <add>, %27, %cst_22 [0] : vector<4x5x32xf32> to vector<5x32xf32>
    %29 = vector.broadcast %7 : vector<1x32xf32> to vector<5x32xf32>
    %30 = arith.addf %28, %29 : vector<5x32xf32>
    %31 = arith.truncf %30 : vector<5x32xf32> to vector<5x32xbf16>
    %c0_23 = arith.constant 0 : index
    %c0_24 = arith.constant 0 : index
    %c0_25 = arith.constant 0 : index
    %32 = vector.load %arg4[%c0_23, %c0_24, %c0_25] : memref<1x5x32xbf16, #tpu.memory_space<vmem>>, vector<1x5x32xbf16>
    %33 = vector.shape_cast %32 : vector<1x5x32xbf16> to vector<5x32xbf16>
    %34 = vector.shape_cast %31 : vector<5x32xbf16> to vector<1x5x32xbf16>
    tpu.vector_store %arg4[%c0_23, %c0_24, %c0_25], %34 {strides = array<i32>} : memref<1x5x32xbf16, #tpu.memory_space<vmem>>, vector<1x5x32xbf16>,
    return
  }
  func.func @transform_0(%arg0: i32) -> (i32, i32, i32, i32, i32) {
    %c0_i32 = arith.constant 0 : i32
    %c0_i32_0 = arith.constant 0 : i32
    %c0_i32_1 = arith.constant 0 : i32
    %c0_i32_2 = arith.constant 0 : i32
    %c0_i32_3 = arith.constant 0 : i32
    return %arg0, %c0_i32, %c0_i32_0, %c0_i32_1, %c0_i32_2 : i32, i32, i32, i32, i32
  }
  func.func @transform_1(%arg0: i32) -> (i32, i32, i32) {
    %c0_i32 = arith.constant 0 : i32
    %c0_i32_0 = arith.constant 0 : i32
    %c0_i32_1 = arith.constant 0 : i32
    %c0_i32_2 = arith.constant 0 : i32
    return %c0_i32, %c0_i32_0, %c0_i32_1 : i32, i32, i32
  }
  func.func @transform_2(%arg0: i32) -> (i32, i32) {
    %c0_i32 = arith.constant 0 : i32
    %c0_i32_0 = arith.constant 0 : i32
    %c0_i32_1 = arith.constant 0 : i32
    return %c0_i32, %c0_i32_0 : i32, i32
  }
  func.func @transform_3(%arg0: i32) -> (i32, i32, i32) {
    %c0_i32 = arith.constant 0 : i32
    %c0_i32_0 = arith.constant 0 : i32
    %c0_i32_1 = arith.constant 0 : i32
    return %arg0, %c0_i32, %c0_i32_0 : i32, i32, i32
  }
}

module attributes {stable_mosaic.version = 11 : i64} {
  func.func @_linear_kernel(%arg0: i32, %arg1: memref<10x32xbf16, #tpu.memory_space<vmem>>, %arg2: memref<32x32xbf16, #tpu.memory_space<vmem>>, %arg3: memref<1x32xf32, #tpu.memory_space<vmem>>, %arg4: memref<10x32xbf16, #tpu.memory_space<vmem>>) attributes {dimension_semantics = [#tpu.dimension_semantics<parallel>], iteration_bounds = array<i64: 1>, scalar_prefetch = 0 : i64, scratch_operands = 0 : i64, tpu.core_type = #tpu.core_type<tc>, window_params = [{transform_indices = @transform_0, window_bounds = array<i64: 10, 32>}, {pipeline_mode = #tpu.pipeline_mode<synchronous>, transform_indices = @transform_1, window_bounds = array<i64: 32, 32>}, {pipeline_mode = #tpu.pipeline_mode<synchronous>, transform_indices = @transform_2, window_bounds = array<i64: 1, 32>}, {transform_indices = @transform_3, window_bounds = array<i64: 10, 32>}]} {
    %c0 = arith.constant 0 : index
    %c0_0 = arith.constant 0 : index
    %0 = vector.load %arg1[%c0, %c0_0] : memref<10x32xbf16, #tpu.memory_space<vmem>>, vector<10x32xbf16>
    %c0_1 = arith.constant 0 : index
    %c0_2 = arith.constant 0 : index
    %1 = vector.load %arg2[%c0_1, %c0_2] : memref<32x32xbf16, #tpu.memory_space<vmem>>, vector<32x32xbf16>
    %cst = arith.constant dense<0.000000e+00> : vector<10x32xf32>
    %2 = tpu.matmul %0, %1, %cst {dimension_numbers = #tpu.dot_dimension_numbers<[1], [0], [0], [1], [0, 0, 1, 1], [], []>} : vector<10x32xbf16>, vector<32x32xbf16>, vector<10x32xf32> -> vector<10x32xf32>
    %c0_3 = arith.constant 0 : index
    %c0_4 = arith.constant 0 : index
    %3 = vector.load %arg3[%c0_3, %c0_4] : memref<1x32xf32, #tpu.memory_space<vmem>>, vector<1x32xf32>
    %4 = vector.broadcast %3 : vector<1x32xf32> to vector<10x32xf32>
    %5 = arith.addf %2, %4 : vector<10x32xf32>
    %6 = arith.truncf %5 : vector<10x32xf32> to vector<10x32xbf16>
    %c0_5 = arith.constant 0 : index
    %c0_6 = arith.constant 0 : index
    %7 = vector.load %arg4[%c0_5, %c0_6] : memref<10x32xbf16, #tpu.memory_space<vmem>>, vector<10x32xbf16>
    tpu.vector_store %arg4[%c0_5, %c0_6], %6 {strides = array<i32>} : memref<10x32xbf16, #tpu.memory_space<vmem>>, vector<10x32xbf16>,
    return
  }
  func.func @transform_0(%arg0: i32) -> (i32, i32) {
    %c0_i32 = arith.constant 0 : i32
    %c0_i32_0 = arith.constant 0 : i32
    return %arg0, %c0_i32 : i32, i32
  }
  func.func @transform_1(%arg0: i32) -> (i32, i32) {
    %c0_i32 = arith.constant 0 : i32
    %c0_i32_0 = arith.constant 0 : i32
    %c0_i32_1 = arith.constant 0 : i32
    return %c0_i32, %c0_i32_0 : i32, i32
  }
  func.func @transform_2(%arg0: i32) -> (i32, i32) {
    %c0_i32 = arith.constant 0 : i32
    %c0_i32_0 = arith.constant 0 : i32
    %c0_i32_1 = arith.constant 0 : i32
    return %c0_i32, %c0_i32_0 : i32, i32
  }
  func.func @transform_3(%arg0: i32) -> (i32, i32) {
    %c0_i32 = arith.constant 0 : i32
    %c0_i32_0 = arith.constant 0 : i32
    return %arg0, %c0_i32 : i32, i32
  }
}

module attributes {stable_mosaic.version = 11 : i64} {
  func.func @_ln_res_kernel(%arg0: i32, %arg1: memref<10x32xbf16, #tpu.memory_space<vmem>>, %arg2: memref<10x32xbf16, #tpu.memory_space<vmem>>, %arg3: memref<1x32xf32, #tpu.memory_space<vmem>>, %arg4: memref<1x32xf32, #tpu.memory_space<vmem>>, %arg5: memref<10x32xbf16, #tpu.memory_space<vmem>>) attributes {dimension_semantics = [#tpu.dimension_semantics<parallel>], iteration_bounds = array<i64: 1>, scalar_prefetch = 0 : i64, scratch_operands = 0 : i64, tpu.core_type = #tpu.core_type<tc>, window_params = [{transform_indices = @transform_0, window_bounds = array<i64: 10, 32>}, {transform_indices = @transform_1, window_bounds = array<i64: 10, 32>}, {pipeline_mode = #tpu.pipeline_mode<synchronous>, transform_indices = @transform_2, window_bounds = array<i64: 1, 32>}, {pipeline_mode = #tpu.pipeline_mode<synchronous>, transform_indices = @transform_3, window_bounds = array<i64: 1, 32>}, {transform_indices = @transform_4, window_bounds = array<i64: 10, 32>}]} {
    %c0 = arith.constant 0 : index
    %c0_0 = arith.constant 0 : index
    %0 = vector.load %arg1[%c0, %c0_0] : memref<10x32xbf16, #tpu.memory_space<vmem>>, vector<10x32xbf16>
    %1 = arith.extf %0 : vector<10x32xbf16> to vector<10x32xf32>
    %c0_1 = arith.constant 0 : index
    %c0_2 = arith.constant 0 : index
    %2 = vector.load %arg2[%c0_1, %c0_2] : memref<10x32xbf16, #tpu.memory_space<vmem>>, vector<10x32xbf16>
    %3 = arith.extf %2 : vector<10x32xbf16> to vector<10x32xf32>
    %4 = arith.addf %1, %3 : vector<10x32xf32>
    %c0_3 = arith.constant 0 : index
    %c0_4 = arith.constant 0 : index
    %5 = vector.load %arg3[%c0_3, %c0_4] : memref<1x32xf32, #tpu.memory_space<vmem>>, vector<1x32xf32>
    %c0_5 = arith.constant 0 : index
    %c0_6 = arith.constant 0 : index
    %6 = vector.load %arg4[%c0_5, %c0_6] : memref<1x32xf32, #tpu.memory_space<vmem>>, vector<1x32xf32>
    %cst = arith.constant dense<0.000000e+00> : vector<10xf32>
    %7 = vector.multi_reduction <add>, %4, %cst [1] : vector<10x32xf32> to vector<10xf32>
    %8 = vector.shape_cast %7 : vector<10xf32> to vector<10x1xf32>
    %cst_7 = arith.constant 3.200000e+01 : f32
    %9 = vector.broadcast %cst_7 : f32 to vector<10x1xf32>
    %10 = arith.divf %8, %9 : vector<10x1xf32>
    %11 = vector.broadcast %10 : vector<10x1xf32> to vector<10x32xf32>
    %12 = arith.subf %4, %11 : vector<10x32xf32>
    %13 = arith.mulf %12, %12 : vector<10x32xf32>
    %cst_8 = arith.constant dense<0.000000e+00> : vector<10xf32>
    %14 = vector.multi_reduction <add>, %13, %cst_8 [1] : vector<10x32xf32> to vector<10xf32>
    %15 = vector.shape_cast %14 : vector<10xf32> to vector<10x1xf32>
    %cst_9 = arith.constant 3.200000e+01 : f32
    %16 = vector.broadcast %cst_9 : f32 to vector<10x1xf32>
    %17 = arith.divf %15, %16 : vector<10x1xf32>
    %cst_10 = arith.constant 9.99999974E-6 : f32
    %18 = vector.broadcast %cst_10 : f32 to vector<10x1xf32>
    %19 = arith.addf %17, %18 : vector<10x1xf32>
    %20 = math.rsqrt %19 : vector<10x1xf32>
    %21 = vector.broadcast %20 : vector<10x1xf32> to vector<10x32xf32>
    %22 = arith.mulf %12, %21 : vector<10x32xf32>
    %23 = vector.broadcast %5 : vector<1x32xf32> to vector<10x32xf32>
    %24 = arith.mulf %22, %23 : vector<10x32xf32>
    %25 = vector.broadcast %6 : vector<1x32xf32> to vector<10x32xf32>
    %26 = arith.addf %24, %25 : vector<10x32xf32>
    %27 = arith.truncf %26 : vector<10x32xf32> to vector<10x32xbf16>
    %c0_11 = arith.constant 0 : index
    %c0_12 = arith.constant 0 : index
    %28 = vector.load %arg5[%c0_11, %c0_12] : memref<10x32xbf16, #tpu.memory_space<vmem>>, vector<10x32xbf16>
    tpu.vector_store %arg5[%c0_11, %c0_12], %27 {strides = array<i32>} : memref<10x32xbf16, #tpu.memory_space<vmem>>, vector<10x32xbf16>,
    return
  }
  func.func @transform_0(%arg0: i32) -> (i32, i32) {
    %c0_i32 = arith.constant 0 : i32
    %c0_i32_0 = arith.constant 0 : i32
    return %arg0, %c0_i32 : i32, i32
  }
  func.func @transform_1(%arg0: i32) -> (i32, i32) {
    %c0_i32 = arith.constant 0 : i32
    %c0_i32_0 = arith.constant 0 : i32
    return %arg0, %c0_i32 : i32, i32
  }
  func.func @transform_2(%arg0: i32) -> (i32, i32) {
    %c0_i32 = arith.constant 0 : i32
    %c0_i32_0 = arith.constant 0 : i32
    %c0_i32_1 = arith.constant 0 : i32
    return %c0_i32, %c0_i32_0 : i32, i32
  }
  func.func @transform_3(%arg0: i32) -> (i32, i32) {
    %c0_i32 = arith.constant 0 : i32
    %c0_i32_0 = arith.constant 0 : i32
    %c0_i32_1 = arith.constant 0 : i32
    return %c0_i32, %c0_i32_0 : i32, i32
  }
  func.func @transform_4(%arg0: i32) -> (i32, i32) {
    %c0_i32 = arith.constant 0 : i32
    %c0_i32_0 = arith.constant 0 : i32
    return %arg0, %c0_i32 : i32, i32
  }
}

module attributes {stable_mosaic.version = 11 : i64} {
  func.func @_linear_kernel(%arg0: i32, %arg1: memref<10x32xbf16, #tpu.memory_space<vmem>>, %arg2: memref<32x64xbf16, #tpu.memory_space<vmem>>, %arg3: memref<1x64xf32, #tpu.memory_space<vmem>>, %arg4: memref<10x64xbf16, #tpu.memory_space<vmem>>) attributes {dimension_semantics = [#tpu.dimension_semantics<parallel>], iteration_bounds = array<i64: 1>, scalar_prefetch = 0 : i64, scratch_operands = 0 : i64, tpu.core_type = #tpu.core_type<tc>, window_params = [{transform_indices = @transform_0, window_bounds = array<i64: 10, 32>}, {pipeline_mode = #tpu.pipeline_mode<synchronous>, transform_indices = @transform_1, window_bounds = array<i64: 32, 64>}, {pipeline_mode = #tpu.pipeline_mode<synchronous>, transform_indices = @transform_2, window_bounds = array<i64: 1, 64>}, {transform_indices = @transform_3, window_bounds = array<i64: 10, 64>}]} {
    %c0 = arith.constant 0 : index
    %c0_0 = arith.constant 0 : index
    %0 = vector.load %arg1[%c0, %c0_0] : memref<10x32xbf16, #tpu.memory_space<vmem>>, vector<10x32xbf16>
    %c0_1 = arith.constant 0 : index
    %c0_2 = arith.constant 0 : index
    %1 = vector.load %arg2[%c0_1, %c0_2] : memref<32x64xbf16, #tpu.memory_space<vmem>>, vector<32x64xbf16>
    %cst = arith.constant dense<0.000000e+00> : vector<10x64xf32>
    %2 = tpu.matmul %0, %1, %cst {dimension_numbers = #tpu.dot_dimension_numbers<[1], [0], [0], [1], [0, 0, 1, 1], [], []>} : vector<10x32xbf16>, vector<32x64xbf16>, vector<10x64xf32> -> vector<10x64xf32>
    %c0_3 = arith.constant 0 : index
    %c0_4 = arith.constant 0 : index
    %3 = vector.load %arg3[%c0_3, %c0_4] : memref<1x64xf32, #tpu.memory_space<vmem>>, vector<1x64xf32>
    %4 = vector.broadcast %3 : vector<1x64xf32> to vector<10x64xf32>
    %5 = arith.addf %2, %4 : vector<10x64xf32>
    %6 = arith.truncf %5 : vector<10x64xf32> to vector<10x64xbf16>
    %c0_5 = arith.constant 0 : index
    %c0_6 = arith.constant 0 : index
    %7 = vector.load %arg4[%c0_5, %c0_6] : memref<10x64xbf16, #tpu.memory_space<vmem>>, vector<10x64xbf16>
    tpu.vector_store %arg4[%c0_5, %c0_6], %6 {strides = array<i32>} : memref<10x64xbf16, #tpu.memory_space<vmem>>, vector<10x64xbf16>,
    return
  }
  func.func @transform_0(%arg0: i32) -> (i32, i32) {
    %c0_i32 = arith.constant 0 : i32
    %c0_i32_0 = arith.constant 0 : i32
    return %arg0, %c0_i32 : i32, i32
  }
  func.func @transform_1(%arg0: i32) -> (i32, i32) {
    %c0_i32 = arith.constant 0 : i32
    %c0_i32_0 = arith.constant 0 : i32
    %c0_i32_1 = arith.constant 0 : i32
    return %c0_i32, %c0_i32_0 : i32, i32
  }
  func.func @transform_2(%arg0: i32) -> (i32, i32) {
    %c0_i32 = arith.constant 0 : i32
    %c0_i32_0 = arith.constant 0 : i32
    %c0_i32_1 = arith.constant 0 : i32
    return %c0_i32, %c0_i32_0 : i32, i32
  }
  func.func @transform_3(%arg0: i32) -> (i32, i32) {
    %c0_i32 = arith.constant 0 : i32
    %c0_i32_0 = arith.constant 0 : i32
    return %arg0, %c0_i32 : i32, i32
  }
}

module attributes {stable_mosaic.version = 11 : i64} {
  func.func @_tail_kernel(%arg0: i32, %arg1: memref<10x32xbf16, #tpu.memory_space<vmem>>, %arg2: memref<10x32xbf16, #tpu.memory_space<vmem>>, %arg3: memref<1x32xf32, #tpu.memory_space<vmem>>, %arg4: memref<1x32xf32, #tpu.memory_space<vmem>>, %arg5: memref<32x128xbf16, #tpu.memory_space<vmem>>, %arg6: memref<1x128xf32, #tpu.memory_space<vmem>>, %arg7: memref<128x32xbf16, #tpu.memory_space<vmem>>, %arg8: memref<1x32xf32, #tpu.memory_space<vmem>>, %arg9: memref<1x32xf32, #tpu.memory_space<vmem>>, %arg10: memref<1x32xf32, #tpu.memory_space<vmem>>, %arg11: memref<10x32xbf16, #tpu.memory_space<vmem>>) attributes {dimension_semantics = [#tpu.dimension_semantics<parallel>], iteration_bounds = array<i64: 1>, scalar_prefetch = 0 : i64, scratch_operands = 0 : i64, tpu.core_type = #tpu.core_type<tc>, window_params = [{transform_indices = @transform_0, window_bounds = array<i64: 10, 32>}, {transform_indices = @transform_1, window_bounds = array<i64: 10, 32>}, {pipeline_mode = #tpu.pipeline_mode<synchronous>, transform_indices = @transform_2, window_bounds = array<i64: 1, 32>}, {pipeline_mode = #tpu.pipeline_mode<synchronous>, transform_indices = @transform_3, window_bounds = array<i64: 1, 32>}, {pipeline_mode = #tpu.pipeline_mode<synchronous>, transform_indices = @transform_4, window_bounds = array<i64: 32, 128>}, {pipeline_mode = #tpu.pipeline_mode<synchronous>, transform_indices = @transform_5, window_bounds = array<i64: 1, 128>}, {pipeline_mode = #tpu.pipeline_mode<synchronous>, transform_indices = @transform_6, window_bounds = array<i64: 128, 32>}, {pipeline_mode = #tpu.pipeline_mode<synchronous>, transform_indices = @transform_7, window_bounds = array<i64: 1, 32>}, {pipeline_mode = #tpu.pipeline_mode<synchronous>, transform_indices = @transform_8, window_bounds = array<i64: 1, 32>}, {pipeline_mode = #tpu.pipeline_mode<synchronous>, transform_indices = @transform_9, window_bounds = array<i64: 1, 32>}, {transform_indices = @transform_10, window_bounds = array<i64: 10, 32>}]} {
    %c0 = arith.constant 0 : index
    %c0_0 = arith.constant 0 : index
    %0 = vector.load %arg1[%c0, %c0_0] : memref<10x32xbf16, #tpu.memory_space<vmem>>, vector<10x32xbf16>
    %1 = arith.extf %0 : vector<10x32xbf16> to vector<10x32xf32>
    %c0_1 = arith.constant 0 : index
    %c0_2 = arith.constant 0 : index
    %2 = vector.load %arg2[%c0_1, %c0_2] : memref<10x32xbf16, #tpu.memory_space<vmem>>, vector<10x32xbf16>
    %3 = arith.extf %2 : vector<10x32xbf16> to vector<10x32xf32>
    %4 = arith.addf %1, %3 : vector<10x32xf32>
    %c0_3 = arith.constant 0 : index
    %c0_4 = arith.constant 0 : index
    %5 = vector.load %arg3[%c0_3, %c0_4] : memref<1x32xf32, #tpu.memory_space<vmem>>, vector<1x32xf32>
    %c0_5 = arith.constant 0 : index
    %c0_6 = arith.constant 0 : index
    %6 = vector.load %arg4[%c0_5, %c0_6] : memref<1x32xf32, #tpu.memory_space<vmem>>, vector<1x32xf32>
    %cst = arith.constant dense<0.000000e+00> : vector<10xf32>
    %7 = vector.multi_reduction <add>, %4, %cst [1] : vector<10x32xf32> to vector<10xf32>
    %8 = vector.shape_cast %7 : vector<10xf32> to vector<10x1xf32>
    %cst_7 = arith.constant 3.200000e+01 : f32
    %9 = vector.broadcast %cst_7 : f32 to vector<10x1xf32>
    %10 = arith.divf %8, %9 : vector<10x1xf32>
    %11 = vector.broadcast %10 : vector<10x1xf32> to vector<10x32xf32>
    %12 = arith.subf %4, %11 : vector<10x32xf32>
    %13 = arith.mulf %12, %12 : vector<10x32xf32>
    %cst_8 = arith.constant dense<0.000000e+00> : vector<10xf32>
    %14 = vector.multi_reduction <add>, %13, %cst_8 [1] : vector<10x32xf32> to vector<10xf32>
    %15 = vector.shape_cast %14 : vector<10xf32> to vector<10x1xf32>
    %cst_9 = arith.constant 3.200000e+01 : f32
    %16 = vector.broadcast %cst_9 : f32 to vector<10x1xf32>
    %17 = arith.divf %15, %16 : vector<10x1xf32>
    %cst_10 = arith.constant 9.99999974E-6 : f32
    %18 = vector.broadcast %cst_10 : f32 to vector<10x1xf32>
    %19 = arith.addf %17, %18 : vector<10x1xf32>
    %20 = math.rsqrt %19 : vector<10x1xf32>
    %21 = vector.broadcast %20 : vector<10x1xf32> to vector<10x32xf32>
    %22 = arith.mulf %12, %21 : vector<10x32xf32>
    %23 = vector.broadcast %5 : vector<1x32xf32> to vector<10x32xf32>
    %24 = arith.mulf %22, %23 : vector<10x32xf32>
    %25 = vector.broadcast %6 : vector<1x32xf32> to vector<10x32xf32>
    %26 = arith.addf %24, %25 : vector<10x32xf32>
    %27 = arith.truncf %26 : vector<10x32xf32> to vector<10x32xbf16>
    %c0_11 = arith.constant 0 : index
    %c0_12 = arith.constant 0 : index
    %28 = vector.load %arg5[%c0_11, %c0_12] : memref<32x128xbf16, #tpu.memory_space<vmem>>, vector<32x128xbf16>
    %cst_13 = arith.constant dense<0.000000e+00> : vector<10x128xf32>
    %29 = tpu.matmul %27, %28, %cst_13 {dimension_numbers = #tpu.dot_dimension_numbers<[1], [0], [0], [1], [0, 0, 1, 1], [], []>} : vector<10x32xbf16>, vector<32x128xbf16>, vector<10x128xf32> -> vector<10x128xf32>
    %c0_14 = arith.constant 0 : index
    %c0_15 = arith.constant 0 : index
    %30 = vector.load %arg6[%c0_14, %c0_15] : memref<1x128xf32, #tpu.memory_space<vmem>>, vector<1x128xf32>
    %31 = vector.broadcast %30 : vector<1x128xf32> to vector<10x128xf32>
    %32 = arith.addf %29, %31 : vector<10x128xf32>
    %cst_16 = arith.constant 0.000000e+00 : f32
    %33 = vector.broadcast %cst_16 : f32 to vector<10x128xf32>
    %34 = arith.maximumf %32, %33 : vector<10x128xf32>
    %35 = arith.truncf %34 : vector<10x128xf32> to vector<10x128xbf16>
    %c0_17 = arith.constant 0 : index
    %c0_18 = arith.constant 0 : index
    %36 = vector.load %arg7[%c0_17, %c0_18] : memref<128x32xbf16, #tpu.memory_space<vmem>>, vector<128x32xbf16>
    %cst_19 = arith.constant dense<0.000000e+00> : vector<10x32xf32>
    %37 = tpu.matmul %35, %36, %cst_19 {dimension_numbers = #tpu.dot_dimension_numbers<[1], [0], [0], [1], [0, 0, 1, 1], [], []>} : vector<10x128xbf16>, vector<128x32xbf16>, vector<10x32xf32> -> vector<10x32xf32>
    %c0_20 = arith.constant 0 : index
    %c0_21 = arith.constant 0 : index
    %38 = vector.load %arg8[%c0_20, %c0_21] : memref<1x32xf32, #tpu.memory_space<vmem>>, vector<1x32xf32>
    %39 = vector.broadcast %38 : vector<1x32xf32> to vector<10x32xf32>
    %40 = arith.addf %37, %39 : vector<10x32xf32>
    %41 = arith.addf %40, %26 : vector<10x32xf32>
    %c0_22 = arith.constant 0 : index
    %c0_23 = arith.constant 0 : index
    %42 = vector.load %arg9[%c0_22, %c0_23] : memref<1x32xf32, #tpu.memory_space<vmem>>, vector<1x32xf32>
    %c0_24 = arith.constant 0 : index
    %c0_25 = arith.constant 0 : index
    %43 = vector.load %arg10[%c0_24, %c0_25] : memref<1x32xf32, #tpu.memory_space<vmem>>, vector<1x32xf32>
    %cst_26 = arith.constant dense<0.000000e+00> : vector<10xf32>
    %44 = vector.multi_reduction <add>, %41, %cst_26 [1] : vector<10x32xf32> to vector<10xf32>
    %45 = vector.shape_cast %44 : vector<10xf32> to vector<10x1xf32>
    %cst_27 = arith.constant 3.200000e+01 : f32
    %46 = vector.broadcast %cst_27 : f32 to vector<10x1xf32>
    %47 = arith.divf %45, %46 : vector<10x1xf32>
    %48 = vector.broadcast %47 : vector<10x1xf32> to vector<10x32xf32>
    %49 = arith.subf %41, %48 : vector<10x32xf32>
    %50 = arith.mulf %49, %49 : vector<10x32xf32>
    %cst_28 = arith.constant dense<0.000000e+00> : vector<10xf32>
    %51 = vector.multi_reduction <add>, %50, %cst_28 [1] : vector<10x32xf32> to vector<10xf32>
    %52 = vector.shape_cast %51 : vector<10xf32> to vector<10x1xf32>
    %cst_29 = arith.constant 3.200000e+01 : f32
    %53 = vector.broadcast %cst_29 : f32 to vector<10x1xf32>
    %54 = arith.divf %52, %53 : vector<10x1xf32>
    %cst_30 = arith.constant 9.99999974E-6 : f32
    %55 = vector.broadcast %cst_30 : f32 to vector<10x1xf32>
    %56 = arith.addf %54, %55 : vector<10x1xf32>
    %57 = math.rsqrt %56 : vector<10x1xf32>
    %58 = vector.broadcast %57 : vector<10x1xf32> to vector<10x32xf32>
    %59 = arith.mulf %49, %58 : vector<10x32xf32>
    %60 = vector.broadcast %42 : vector<1x32xf32> to vector<10x32xf32>
    %61 = arith.mulf %59, %60 : vector<10x32xf32>
    %62 = vector.broadcast %43 : vector<1x32xf32> to vector<10x32xf32>
    %63 = arith.addf %61, %62 : vector<10x32xf32>
    %64 = arith.truncf %63 : vector<10x32xf32> to vector<10x32xbf16>
    %c0_31 = arith.constant 0 : index
    %c0_32 = arith.constant 0 : index
    %65 = vector.load %arg11[%c0_31, %c0_32] : memref<10x32xbf16, #tpu.memory_space<vmem>>, vector<10x32xbf16>
    tpu.vector_store %arg11[%c0_31, %c0_32], %64 {strides = array<i32>} : memref<10x32xbf16, #tpu.memory_space<vmem>>, vector<10x32xbf16>,
    return
  }
  func.func @transform_0(%arg0: i32) -> (i32, i32) {
    %c0_i32 = arith.constant 0 : i32
    %c0_i32_0 = arith.constant 0 : i32
    return %arg0, %c0_i32 : i32, i32
  }
  func.func @transform_1(%arg0: i32) -> (i32, i32) {
    %c0_i32 = arith.constant 0 : i32
    %c0_i32_0 = arith.constant 0 : i32
    return %arg0, %c0_i32 : i32, i32
  }
  func.func @transform_2(%arg0: i32) -> (i32, i32) {
    %c0_i32 = arith.constant 0 : i32
    %c0_i32_0 = arith.constant 0 : i32
    %c0_i32_1 = arith.constant 0 : i32
    return %c0_i32, %c0_i32_0 : i32, i32
  }
  func.func @transform_3(%arg0: i32) -> (i32, i32) {
    %c0_i32 = arith.constant 0 : i32
    %c0_i32_0 = arith.constant 0 : i32
    %c0_i32_1 = arith.constant 0 : i32
    return %c0_i32, %c0_i32_0 : i32, i32
  }
  func.func @transform_4(%arg0: i32) -> (i32, i32) {
    %c0_i32 = arith.constant 0 : i32
    %c0_i32_0 = arith.constant 0 : i32
    %c0_i32_1 = arith.constant 0 : i32
    return %c0_i32, %c0_i32_0 : i32, i32
  }
  func.func @transform_5(%arg0: i32) -> (i32, i32) {
    %c0_i32 = arith.constant 0 : i32
    %c0_i32_0 = arith.constant 0 : i32
    %c0_i32_1 = arith.constant 0 : i32
    return %c0_i32, %c0_i32_0 : i32, i32
  }
  func.func @transform_6(%arg0: i32) -> (i32, i32) {
    %c0_i32 = arith.constant 0 : i32
    %c0_i32_0 = arith.constant 0 : i32
    %c0_i32_1 = arith.constant 0 : i32
    return %c0_i32, %c0_i32_0 : i32, i32
  }
  func.func @transform_7(%arg0: i32) -> (i32, i32) {
    %c0_i32 = arith.constant 0 : i32
    %c0_i32_0 = arith.constant 0 : i32
    %c0_i32_1 = arith.constant 0 : i32
    return %c0_i32, %c0_i32_0 : i32, i32
  }
  func.func @transform_8(%arg0: i32) -> (i32, i32) {
    %c0_i32 = arith.constant 0 : i32
    %c0_i32_0 = arith.constant 0 : i32
    %c0_i32_1 = arith.constant 0 : i32
    return %c0_i32, %c0_i32_0 : i32, i32
  }
  func.func @transform_9(%arg0: i32) -> (i32, i32) {
    %c0_i32 = arith.constant 0 : i32
    %c0_i32_0 = arith.constant 0 : i32
    %c0_i32_1 = arith.constant 0 : i32
    return %c0_i32, %c0_i32_0 : i32, i32
  }
  func.func @transform_10(%arg0: i32) -> (i32, i32) {
    %c0_i32 = arith.constant 0 : i32
    %c0_i32_0 = arith.constant 0 : i32
    return %arg0, %c0_i32 : i32, i32
  }
}

module attributes {stable_mosaic.version = 11 : i64} {
  func.func @_cross_attn_kernel(%arg0: i32, %arg1: memref<1x4x5x8xbf16, #tpu.memory_space<vmem>>, %arg2: memref<1x2x4x5x8xbf16, #tpu.memory_space<vmem>>, %arg3: memref<4x8x32xbf16, #tpu.memory_space<vmem>>, %arg4: memref<1x32xf32, #tpu.memory_space<vmem>>, %arg5: memref<1x5x32xbf16, #tpu.memory_space<vmem>>) attributes {dimension_semantics = [#tpu.dimension_semantics<parallel>], iteration_bounds = array<i64: 2>, scalar_prefetch = 0 : i64, scratch_operands = 0 : i64, tpu.core_type = #tpu.core_type<tc>, window_params = [{transform_indices = @transform_0, window_bounds = array<i64: 1, 4, 5, 8>}, {transform_indices = @transform_1, window_bounds = array<i64: 1, 2, 4, 5, 8>}, {pipeline_mode = #tpu.pipeline_mode<synchronous>, transform_indices = @transform_2, window_bounds = array<i64: 4, 8, 32>}, {pipeline_mode = #tpu.pipeline_mode<synchronous>, transform_indices = @transform_3, window_bounds = array<i64: 1, 32>}, {transform_indices = @transform_4, window_bounds = array<i64: 1, 5, 32>}]} {
    %c0 = arith.constant 0 : index
    %c0_0 = arith.constant 0 : index
    %c0_1 = arith.constant 0 : index
    %c0_2 = arith.constant 0 : index
    %0 = vector.load %arg1[%c0, %c0_0, %c0_1, %c0_2] : memref<1x4x5x8xbf16, #tpu.memory_space<vmem>>, vector<1x4x5x8xbf16>
    %1 = vector.shape_cast %0 : vector<1x4x5x8xbf16> to vector<4x5x8xbf16>
    %c0_3 = arith.constant 0 : index
    %c0_4 = arith.constant 0 : index
    %c0_5 = arith.constant 0 : index
    %c0_6 = arith.constant 0 : index
    %c0_7 = arith.constant 0 : index
    %2 = vector.load %arg2[%c0_3, %c0_4, %c0_5, %c0_6, %c0_7] : memref<1x2x4x5x8xbf16, #tpu.memory_space<vmem>>, vector<1x1x4x5x8xbf16>
    %3 = vector.shape_cast %2 : vector<1x1x4x5x8xbf16> to vector<4x5x8xbf16>
    %c0_8 = arith.constant 0 : index
    %c1 = arith.constant 1 : index
    %c0_9 = arith.constant 0 : index
    %c0_10 = arith.constant 0 : index
    %c0_11 = arith.constant 0 : index
    %4 = vector.load %arg2[%c0_8, %c1, %c0_9, %c0_10, %c0_11] : memref<1x2x4x5x8xbf16, #tpu.memory_space<vmem>>, vector<1x1x4x5x8xbf16>
    %5 = vector.shape_cast %4 : vector<1x1x4x5x8xbf16> to vector<4x5x8xbf16>
    %c0_12 = arith.constant 0 : index
    %c0_13 = arith.constant 0 : index
    %c0_14 = arith.constant 0 : index
    %6 = vector.load %arg3[%c0_12, %c0_13, %c0_14] : memref<4x8x32xbf16, #tpu.memory_space<vmem>>, vector<4x8x32xbf16>
    %c0_15 = arith.constant 0 : index
    %c0_16 = arith.constant 0 : index
    %7 = vector.load %arg4[%c0_15, %c0_16] : memref<1x32xf32, #tpu.memory_space<vmem>>, vector<1x32xf32>
    %cst = arith.constant dense<0.000000e+00> : vector<4x5x5xf32>
    %8 = tpu.matmul %1, %3, %cst {dimension_numbers = #tpu.dot_dimension_numbers<[2], [2], [1], [1], [0, 0, 0, 1, 1, 1], [0], [0]>} : vector<4x5x8xbf16>, vector<4x5x8xbf16>, vector<4x5x5xf32> -> vector<4x5x5xf32>
    %9 = tpu.iota {dimensions = array<i32: 1>} : vector<4x5x5xi32>
    %10 = tpu.iota {dimensions = array<i32: 2>} : vector<4x5x5xi32>
    %11 = arith.cmpi sle, %10, %9 : vector<4x5x5xi32>
    %cst_17 = arith.constant -1.000000e+30 : f32
    %12 = vector.broadcast %cst_17 : f32 to vector<4x5x5xf32>
    %13 = arith.select %11, %8, %12 : vector<4x5x5xi1>, vector<4x5x5xf32>
    %cst_18 = arith.constant dense<0xFF800000> : vector<4x5xf32>
    %14 = vector.multi_reduction <maximumf>, %13, %cst_18 [2] : vector<4x5x5xf32> to vector<4x5xf32>
    %15 = vector.shape_cast %14 : vector<4x5xf32> to vector<4x5x1xf32>
    %16 = vector.broadcast %15 : vector<4x5x1xf32> to vector<4x5x5xf32>
    %17 = arith.subf %13, %16 : vector<4x5x5xf32>
    %18 = math.exp %17 : vector<4x5x5xf32>
    %cst_19 = arith.constant dense<0.000000e+00> : vector<4x5xf32>
    %19 = vector.multi_reduction <add>, %18, %cst_19 [2] : vector<4x5x5xf32> to vector<4x5xf32>
    %20 = vector.shape_cast %19 : vector<4x5xf32> to vector<4x5x1xf32>
    %21 = tpu.reciprocal %20 {approx = true} : vector<4x5x1xf32> -> vector<4x5x1xf32>
    %22 = vector.broadcast %21 : vector<4x5x1xf32> to vector<4x5x5xf32>
    %23 = arith.mulf %18, %22 : vector<4x5x5xf32>
    %24 = arith.truncf %23 : vector<4x5x5xf32> to vector<4x5x5xbf16>
    %cst_20 = arith.constant dense<0.000000e+00> : vector<4x5x8xf32>
    %25 = tpu.matmul %24, %5, %cst_20 {dimension_numbers = #tpu.dot_dimension_numbers<[2], [1], [1], [2], [0, 0, 0, 1, 1, 2], [0], [0]>} : vector<4x5x5xbf16>, vector<4x5x8xbf16>, vector<4x5x8xf32> -> vector<4x5x8xf32>
    %26 = arith.truncf %25 : vector<4x5x8xf32> to vector<4x5x8xbf16>
    %cst_21 = arith.constant dense<0.000000e+00> : vector<4x5x32xf32>
    %27 = tpu.matmul %26, %6, %cst_21 {dimension_numbers = #tpu.dot_dimension_numbers<[2], [1], [1], [2], [0, 0, 0, 1, 1, 2], [0], [0]>} : vector<4x5x8xbf16>, vector<4x8x32xbf16>, vector<4x5x32xf32> -> vector<4x5x32xf32>
    %cst_22 = arith.constant dense<0.000000e+00> : vector<5x32xf32>
    %28 = vector.multi_reduction <add>, %27, %cst_22 [0] : vector<4x5x32xf32> to vector<5x32xf32>
    %29 = vector.broadcast %7 : vector<1x32xf32> to vector<5x32xf32>
    %30 = arith.addf %28, %29 : vector<5x32xf32>
    %31 = arith.truncf %30 : vector<5x32xf32> to vector<5x32xbf16>
    %c0_23 = arith.constant 0 : index
    %c0_24 = arith.constant 0 : index
    %c0_25 = arith.constant 0 : index
    %32 = vector.load %arg5[%c0_23, %c0_24, %c0_25] : memref<1x5x32xbf16, #tpu.memory_space<vmem>>, vector<1x5x32xbf16>
    %33 = vector.shape_cast %32 : vector<1x5x32xbf16> to vector<5x32xbf16>
    %34 = vector.shape_cast %31 : vector<5x32xbf16> to vector<1x5x32xbf16>
    tpu.vector_store %arg5[%c0_23, %c0_24, %c0_25], %34 {strides = array<i32>} : memref<1x5x32xbf16, #tpu.memory_space<vmem>>, vector<1x5x32xbf16>,
    return
  }
  func.func @transform_0(%arg0: i32) -> (i32, i32, i32, i32) {
    %c0_i32 = arith.constant 0 : i32
    %c0_i32_0 = arith.constant 0 : i32
    %c0_i32_1 = arith.constant 0 : i32
    %c0_i32_2 = arith.constant 0 : i32
    return %arg0, %c0_i32, %c0_i32_0, %c0_i32_1 : i32, i32, i32, i32
  }
  func.func @transform_1(%arg0: i32) -> (i32, i32, i32, i32, i32) {
    %c0_i32 = arith.constant 0 : i32
    %c0_i32_0 = arith.constant 0 : i32
    %c0_i32_1 = arith.constant 0 : i32
    %c0_i32_2 = arith.constant 0 : i32
    %c0_i32_3 = arith.constant 0 : i32
    return %arg0, %c0_i32, %c0_i32_0, %c0_i32_1, %c0_i32_2 : i32, i32, i32, i32, i32
  }
  func.func @transform_2(%arg0: i32) -> (i32, i32, i32) {
    %c0_i32 = arith.constant 0 : i32
    %c0_i32_0 = arith.constant 0 : i32
    %c0_i32_1 = arith.constant 0 : i32
    %c0_i32_2 = arith.constant 0 : i32
    return %c0_i32, %c0_i32_0, %c0_i32_1 : i32, i32, i32
  }
  func.func @transform_3(%arg0: i32) -> (i32, i32) {
    %c0_i32 = arith.constant 0 : i32
    %c0_i32_0 = arith.constant 0 : i32
    %c0_i32_1 = arith.constant 0 : i32
    return %c0_i32, %c0_i32_0 : i32, i32
  }
  func.func @transform_4(%arg0: i32) -> (i32, i32, i32) {
    %c0_i32 = arith.constant 0 : i32
    %c0_i32_0 = arith.constant 0 : i32
    %c0_i32_1 = arith.constant 0 : i32
    return %arg0, %c0_i32, %c0_i32_0 : i32, i32, i32
  }
}

module attributes {stable_mosaic.version = 11 : i64} {
  func.func @_linear_softmax_kernel(%arg0: i32, %arg1: memref<10x32xbf16, #tpu.memory_space<vmem>>, %arg2: memref<32x128xbf16, #tpu.memory_space<vmem>>, %arg3: memref<1x128xf32, #tpu.memory_space<vmem>>, %arg4: memref<10x128xf32, #tpu.memory_space<vmem>>) attributes {dimension_semantics = [#tpu.dimension_semantics<parallel>], iteration_bounds = array<i64: 1>, scalar_prefetch = 0 : i64, scratch_operands = 0 : i64, tpu.core_type = #tpu.core_type<tc>, window_params = [{transform_indices = @transform_0, window_bounds = array<i64: 10, 32>}, {pipeline_mode = #tpu.pipeline_mode<synchronous>, transform_indices = @transform_1, window_bounds = array<i64: 32, 128>}, {pipeline_mode = #tpu.pipeline_mode<synchronous>, transform_indices = @transform_2, window_bounds = array<i64: 1, 128>}, {transform_indices = @transform_3, window_bounds = array<i64: 10, 128>}]} {
    %c0 = arith.constant 0 : index
    %c0_0 = arith.constant 0 : index
    %0 = vector.load %arg1[%c0, %c0_0] : memref<10x32xbf16, #tpu.memory_space<vmem>>, vector<10x32xbf16>
    %c0_1 = arith.constant 0 : index
    %c0_2 = arith.constant 0 : index
    %1 = vector.load %arg2[%c0_1, %c0_2] : memref<32x128xbf16, #tpu.memory_space<vmem>>, vector<32x128xbf16>
    %cst = arith.constant dense<0.000000e+00> : vector<10x128xf32>
    %2 = tpu.matmul %0, %1, %cst {dimension_numbers = #tpu.dot_dimension_numbers<[1], [0], [0], [1], [0, 0, 1, 1], [], []>} : vector<10x32xbf16>, vector<32x128xbf16>, vector<10x128xf32> -> vector<10x128xf32>
    %c0_3 = arith.constant 0 : index
    %c0_4 = arith.constant 0 : index
    %3 = vector.load %arg3[%c0_3, %c0_4] : memref<1x128xf32, #tpu.memory_space<vmem>>, vector<1x128xf32>
    %4 = vector.broadcast %3 : vector<1x128xf32> to vector<10x128xf32>
    %5 = arith.addf %2, %4 : vector<10x128xf32>
    %cst_5 = arith.constant dense<0xFF800000> : vector<10xf32>
    %6 = vector.multi_reduction <maximumf>, %5, %cst_5 [1] : vector<10x128xf32> to vector<10xf32>
    %7 = vector.shape_cast %6 : vector<10xf32> to vector<10x1xf32>
    %8 = vector.broadcast %7 : vector<10x1xf32> to vector<10x128xf32>
    %9 = arith.subf %5, %8 : vector<10x128xf32>
    %10 = math.exp %9 : vector<10x128xf32>
    %cst_6 = arith.constant dense<0.000000e+00> : vector<10xf32>
    %11 = vector.multi_reduction <add>, %10, %cst_6 [1] : vector<10x128xf32> to vector<10xf32>
    %12 = vector.shape_cast %11 : vector<10xf32> to vector<10x1xf32>
    %13 = vector.broadcast %12 : vector<10x1xf32> to vector<10x128xf32>
    %14 = arith.divf %10, %13 : vector<10x128xf32>
    %c0_7 = arith.constant 0 : index
    %c0_8 = arith.constant 0 : index
    %15 = vector.load %arg4[%c0_7, %c0_8] : memref<10x128xf32, #tpu.memory_space<vmem>>, vector<10x128xf32>
    tpu.vector_store %arg4[%c0_7, %c0_8], %14 {strides = array<i32>} : memref<10x128xf32, #tpu.memory_space<vmem>>, vector<10x128xf32>,
    return
  }
  func.func @transform_0(%arg0: i32) -> (i32, i32) {
    %c0_i32 = arith.constant 0 : i32
    %c0_i32_0 = arith.constant 0 : i32
    return %arg0, %c0_i32 : i32, i32
  }
  func.func @transform_1(%arg0: i32) -> (i32, i32) {
    %c0_i32 = arith.constant 0 : i32
    %c0_i32_0 = arith.constant 0 : i32
    %c0_i32_1 = arith.constant 0 : i32
    return %c0_i32, %c0_i32_0 : i32, i32
  }
  func.func @transform_2(%arg0: i32) -> (i32, i32) {
    %c0_i32 = arith.constant 0 : i32
    %c0_i32_0 = arith.constant 0 : i32
    %c0_i32_1 = arith.constant 0 : i32
    return %c0_i32, %c0_i32_0 : i32, i32
  }
  func.func @transform_3(%arg0: i32) -> (i32, i32) {
    %c0_i32 = arith.constant 0 : i32
    %c0_i32_0 = arith.constant 0 : i32
    return %arg0, %c0_i32 : i32, i32
  }
}

</mosaic_0001>

<bundles_post_ra>
// kernel: transformer_forward.27
= control target key start
LH: loop header
LB: loop body
LE: loop exit
PB: predicated region body
PF: predicated region fallthrough
CT: control target
= control target key end

     0   :  { %vm42_vm0 = vcmask 261120   ;;  %vm62_vm1 = vcmask 781312   ;;  %vm64_vm2 = vcmask 778240   ;;  %s128_s1 = inlined_call_operand.vmem [shape: bf16[32,96], index: 1, kind: input, shape index: {}]   ;;  %s129_s0 = inlined_call_operand.vmem [shape: bf16[10,32], index: 0, kind: input, shape index: {}]   ;;  %s130_s2 = inlined_call_operand.vmem [shape: f32[1,96], index: 2, kind: input, shape index: {}]   ;;  %s131_s3 = inlined_call_operand.vmem [shape: bf16[10,96], index: 3, kind: output, shape index: {}]  }
   0x1   :  { %v85_v0 = vld [vmem:[%s128_s1 + $0x8] sm:$0xff]  ;;  %v84_v1 = vld [vmem:[%s128_s1] sm:$0xff] }
   0x2   :  { %52 = vmatpush.bf16.msra.mxu0 %v85_v0  ;;  %v72_v2 = vld [vmem:[%s129_s0] sm:$0xf]  ;;  %v83_v3 = vld [vmem:[%s129_s0] sm:$0x10] }
   0x3   :  { %v73_v4 = vor.u32 %v83_v3, %v72_v2  ;;  %v86_v5 = vld [vmem:[%s130_s2] ss:$0 sm:$0xff] }
   0x6   :  { %53 = vmatpush.bf16.msra.mxu0 %v84_v1 }
   0x9   :  { %82 = vmatmul.msk.bf16.vlgmr.msra.gmra.mxu0 %vm42_vm0, %v73_v4 }
  0x86   :  { %v55_v6 = vpop.f32.mrf.mxu0 }
  0x87   :  { %v56_v7 = vadd.f32 %v86_v5, %v55_v6 }
  0x89   :  { %v60_v8 = vpack.c.bf16 %v56_v7, %v56_v7 }
  0x8b   :  { %63 = vst.msk [vmem:[%s131_s3] sm:$0xf] %vm62_vm1, %v60_v8 }
  0x8e   :  { %v57_v9 = vpop.f32.mrf.mxu0 }
  0x8f   :  { %v58_v10 = vadd.f32 %v86_v5, %v57_v9 }
  0x91   :  { %v61_v11 = vpack.c.bf16 %v58_v10, %v58_v10 }
  0x93   :  { %65 = vst.msk [vmem:[%s131_s3 + $0x4] sm:$0x1] %vm64_vm2, %v61_v11 }

// kernel: transformer_forward.30
= control target key start
LH: loop header
LB: loop body
LE: loop exit
PB: predicated region body
PF: predicated region fallthrough
CT: control target
= control target key end

     0   :  { %vm42_vm0 = vcmask 261120   ;;  %vm62_vm1 = vcmask 257024   ;;  %vm64_vm2 = vcmask 253952   ;;  %s128_s1 = inlined_call_operand.vmem [shape: bf16[32,32], index: 1, kind: input, shape index: {}]   ;;  %s129_s0 = inlined_call_operand.vmem [shape: bf16[10,32], index: 0, kind: input, shape index: {}]   ;;  %s130_s2 = inlined_call_operand.vmem [shape: f32[1,32], index: 2, kind: input, shape index: {}]   ;;  %s131_s3 = inlined_call_operand.vmem [shape: bf16[10,32], index: 3, kind: output, shape index: {}]  }
   0x1   :  { %v85_v0 = vld [vmem:[%s128_s1 + $0x8] sm:$0xff]  ;;  %v84_v1 = vld [vmem:[%s128_s1] sm:$0xff] }
   0x2   :  { %52 = vmatpush.bf16.msra.mxu0 %v85_v0  ;;  %v72_v2 = vld [vmem:[%s129_s0] sm:$0xf]  ;;  %v83_v3 = vld [vmem:[%s129_s0] sm:$0x10] }
   0x3   :  { %v73_v4 = vor.u32 %v83_v3, %v72_v2  ;;  %v86_v5 = vld [vmem:[%s130_s2] ss:$0 sm:$0xff] }
   0x6   :  { %53 = vmatpush.bf16.msra.mxu0 %v84_v1 }
   0x9   :  { %82 = vmatmul.msk.bf16.vlgmr.msra.gmra.mxu0 %vm42_vm0, %v73_v4 }
  0x86   :  { %v55_v6 = vpop.f32.mrf.mxu0 }
  0x87   :  { %v56_v7 = vadd.f32 %v86_v5, %v55_v6 }
  0x89   :  { %v60_v8 = vpack.c.bf16 %v56_v7, %v56_v7 }
  0x8b   :  { %63 = vst.msk [vmem:[%s131_s3] sm:$0xf] %vm62_vm1, %v60_v8 }
  0x8e   :  { %v57_v9 = vpop.f32.mrf.mxu0 }
  0x8f   :  { %v58_v10 = vadd.f32 %v86_v5, %v57_v9 }
  0x91   :  { %v61_v11 = vpack.c.bf16 %v58_v10, %v58_v10 }
  0x93   :  { %65 = vst.msk [vmem:[%s131_s3 + $0x4] sm:$0x1] %vm64_vm2, %v61_v11 }

// kernel: transformer_forward.28
= control target key start
LH: loop header
LB: loop body
LE: loop exit
PB: predicated region body
PF: predicated region fallthrough
CT: control target
= control target key end

     0   :  { %s643_s12 = smov 0   ;;  %s721_s0 = inlined_call_operand.vmem [shape: bf16[2,3,4,5,8], index: 0, kind: input, shape index: {}]   ;;  %s722_s1 = inlined_call_operand.vmem [shape: bf16[4,8,32], index: 1, kind: input, shape index: {}]   ;;  %s723_s2 = inlined_call_operand.vmem [shape: f32[1,32], index: 2, kind: input, shape index: {}]   ;;  %s724_s3 = inlined_call_operand.vmem [shape: bf16[2,5,32], index: 3, kind: output, shape index: {}]  }
   0x1 LB: > { %s558_s13 = sadd.s32 4294967295, %s620_s12   ;;  %p562_p0 = scmp.ge.s32.totalorder %s620_s12, 1  ;;  %s620_s12 = sphi %s643_s12, %s13_s12  }
   0x2   : > { %p137_p1 = scmp.lt.s32.totalorder %s620_s12, 3 }
   0x4   : > { %p138_p2 = pnand %p562_p0, %p137_p1 }
   0x5   : > { %p160_p3 = scmp.lt.s32.totalorder (!%p138_p2), %s558_s13, 1 }
   0x6   : > { %141 = sbr.rel (%p138_p2) target bundleno = 696 (0x2b8), region = 32 }
   0xb   : > { %s726_s13 = smov (!%p160_p3, %s558_s13), 1  ;;  %vm189_vm0 = vcmask 64512   ;;  %v266_v12 = vlaneseq  ;;  %vm275_vm2 = vcmask 36864   ;;  %vm328_vm3 = vcmask 1041408  }
   0xc   : > { %s587_s14 = smul.u32 48, %s726_s13  ;;  %vm329_vm4 = vcmask 1042432   ;;  %v622_v51 = vmov 65535   ;;  %vm324_vm5 = vcmask 39936   ;;  %vm412_vm6 = vcmask 1043456   ;;  %s564_s26 = sshll.u32 %s726_s13, 2 }
   0xd   : > { %v267_v13 = vshrl.u32 %v266_v12, 7  ;;  %v269_v14 = vand.u32 127, %v266_v12  ;;  %v330_v52 = vsel %vm328_vm3, 4294967295, %v622_v51  ;;  %vm486_vm7 = vcmask 258048   ;;  %s168_s4 = scalar_lea.vmem %s724_s3, %s564_s26 }
   0xe   : > { %s657_s17 = scalar_lea.vmem %s721_s0, %s587_s14  ;;  %v331_v53 = vsel %vm329_vm4, %v330_v52, 0  ;;  %vm499_vm8 = vcmask 256000   ;;  %vm500_vm9 = vsmask.f32 2304 }
   0xf   : > { %v565_v0 = vld [vmem:[%s657_s17 + $0x10] sm:$0x7]  ;;  %v567_v1 = vld [vmem:[%s657_s17 + $0x18] sm:$0x7]  ;;  %v568_v2 = vld [vmem:[%s657_s17 + $0x1c] sm:$0x7]  ;;  %vm270_vm1 = vcmp.le.s32.totalorder %v269_v14, %v267_v13 }
  0x10   : > { %v194_v3 = vsel %vm189_vm0, %v565_v0, 0  ;;  %v232_v4 = vsel %vm189_vm0, %v567_v1, 0  ;;  %v251_v5 = vsel %vm189_vm0, %v568_v2, 0  ;;  %v566_v6 = vld [vmem:[%s657_s17 + $0x14] sm:$0x7]  ;;  %vm501_vm10 = vmand %vm499_vm8, %vm500_vm9 }
  0x11   : > { %203 = vmatpush.bf16.xpose.msra.mxu0 %v194_v3  ;;  %241 = vmatpush.bf16.xpose.msra.mxu2 %v232_v4  ;;  %v213_v7 = vsel %vm189_vm0, %v566_v6, 0  ;;  %v170_v8 = vld [vmem:[%s657_s17] sm:$0x7]  ;;  %v172_v9 = vld [vmem:[%s657_s17 + $0x8] sm:$0x7] }
  0x12   : > { %260 = vmatpush.bf16.xpose.msra.mxu3 %v251_v5  ;;  %222 = vmatpush.bf16.xpose.msra.mxu1 %v213_v7  ;;  %v173_v10 = vld [vmem:[%s657_s17 + $0xc] sm:$0x7]  ;;  %v171_v11 = vld [vmem:[%s657_s17 + $0x4] sm:$0x7]  ;;  %v569_v54 = vld [vmem:[%s657_s17 + $0x20] sm:$0x7] }
  0x13   : > { %v333_v55 = vand.u32 %v569_v54, %v331_v53  ;;  %v571_v56 = vld [vmem:[%s657_s17 + $0x28] sm:$0x7]  ;;  %v570_v58 = vld [vmem:[%s657_s17 + $0x24] sm:$0x7]  ;;  %v572_v60 = vld [vmem:[%s657_s17 + $0x2c] sm:$0x7] }
  0x14   : > { %v371_v57 = vand.u32 %v571_v56, %v331_v53  ;;  %v352_v59 = vand.u32 %v570_v58, %v331_v53  ;;  %v390_v61 = vand.u32 %v572_v60, %v331_v53  ;;  %v184_v14 = vld [vmem:[%s722_s1] sm:$0xf] }
  0x18   : > { %573 = vmatmul.msk.bf16.vlgmr.msra.gmra.mxu0 %vm189_vm0, %v170_v8  ;;  %575 = vmatmul.msk.bf16.vlgmr.msra.gmra.mxu2 %vm189_vm0, %v172_v9 }
  0x19   : > { %576 = vmatmul.msk.bf16.vlgmr.msra.gmra.mxu3 %vm189_vm0, %v173_v10  ;;  %574 = vmatmul.msk.bf16.vlgmr.msra.gmra.mxu1 %vm189_vm0, %v171_v11 }
  0x1a   : > { %342 = vmatpush.bf16.msrb.mxu0 %v333_v55  ;;  %380 = vmatpush.bf16.msrb.mxu2 %v371_v57 }
  0x1b   : > { %361 = vmatpush.bf16.msrb.mxu1 %v352_v59  ;;  %399 = vmatpush.bf16.msrb.mxu3 %v390_v61 }
  0x95   : > { %v205_v15 = vpop.f32.mrf.mxu0 }
  0x96   : > { %v271_v16 = vsel %vm270_vm1, %v205_v15, -1e+30  ;;  %v224_v18 = vpop.f32.mrf.mxu1  ;;  %v414_v15 = vsel %vm412_vm6, %v184_v14, 0 }
  0x97   : > { %v276_v17 = vsel %vm275_vm2, %v271_v16, -inf  ;;  %v272_v19 = vsel %vm270_vm1, %v224_v18, -1e+30  ;;  %423 = vmatpush.bf16.msra.mxu0 %v414_v15 }
  0x98   : > { %277 = vmax.xlane.f32.xlu1 %v276_v17  ;;  %v279_v24 = vsel %vm275_vm2, %v272_v19, -inf  ;;  %v187_v17 = vld [vmem:[%s722_s1 + $0xc] sm:$0xf] }
  0x9b   : > { %v243_v20 = vpop.f32.mrf.mxu2 }
  0x9c   : > { %v273_v21 = vsel %vm270_vm1, %v243_v20, -1e+30  ;;  %v262_v22 = vpop.f32.mrf.mxu3  ;;  %v185_v20 = vld [vmem:[%s722_s1 + $0x4] sm:$0xf] }
  0x9d   : > { %v282_v23 = vsel %vm275_vm2, %v273_v21, -inf  ;;  %v207_v25 = vpop.f32.mrf.mxu0  ;;  %v274_v27 = vsel %vm270_vm1, %v262_v22, -1e+30 }
  0x9e   : > { %283 = vmax.xlane.f32.xlu0 %v282_v23  ;;  %v226_v26 = vpop.f32.mrf.mxu1  ;;  %v285_v29 = vsel %vm275_vm2, %v274_v27, -inf }
  0xa0   : > { %280 = vmax.xlane.f32.xlu1 %v279_v24 }
  0xa3   : > { %v245_v28 = vpop.f32.mrf.mxu2 }
  0xa4   : > { %v264_v30 = vpop.f32.mrf.mxu3 }
  0xa6   : > { %286 = vmax.xlane.f32.xlu0 %v285_v29 }
 0x10b   : > { %v278_v31 = vpop.xlane.xlu1 %277 }
 0x10c   : > { %v288_v32 = vsub.f32 %v271_v16, %v278_v31  ;;  %v186_v16 = vld [vmem:[%s722_s1 + $0x8] sm:$0xf] }
 0x10d   : > { %v452_v18 = vsel %vm412_vm6, %v186_v16, 0 }
 0x10e   : > { %v292_v33 = vmul.f32 1.442695, %v288_v32  ;;  %461 = vmatpush.bf16.msra.mxu2 %v452_v18 }
 0x110   : > { %598 = vpow2.f32 %v292_v33 }
 0x111   : > { %v284_v34 = vpop.xlane.xlu0 %283 }
 0x112   : > { %v290_v35 = vsub.f32 %v273_v21, %v284_v34  ;;  %v433_v21 = vsel %vm412_vm6, %v185_v20, 0 }
 0x113   : > { %v281_v36 = vpop.xlane.xlu1 %280  ;;  %442 = vmatpush.bf16.msra.mxu1 %v433_v21 }
 0x114   : > { %v296_v37 = vmul.f32 1.442695, %v290_v35  ;;  %v289_v38 = vsub.f32 %v272_v19, %v281_v36  ;;  %v471_v19 = vsel %vm412_vm6, %v187_v17, 0 }
 0x115   : > { %480 = vmatpush.bf16.msra.mxu3 %v471_v19 }
 0x116   : > { %v599_v39 = vpop.eup %598  ;;  %600 = vpow2.f32 %v296_v37  ;;  %v294_v40 = vmul.f32 1.442695, %v289_v38 }
 0x117   : > { %v300_v41 = vsel %vm275_vm2, %v599_v39, 0.0 }
 0x118   : > { %602 = vpow2.f32 %v294_v40  ;;  %301 = vadd.xlane.f32.xlu0 %v300_v41 }
 0x119   : > { %v287_v42 = vpop.xlane.xlu0 %286 }
 0x11a   : > { %v291_v43 = vsub.f32 %v274_v27, %v287_v42 }
 0x11c   : > { %v601_v44 = vpop.eup %600  ;;  %v298_v45 = vmul.f32 1.442695, %v291_v43 }
 0x11d   : > { %v306_v46 = vsel %vm275_vm2, %v601_v44, 0.0 }
 0x11e   : > { %v603_v47 = vpop.eup %602  ;;  %604 = vpow2.f32 %v298_v45  ;;  %307 = vadd.xlane.f32.xlu2 %v306_v46  ;;  %v597_v46 = vld [vmem:[%s723_s2] ss:$0 sm:$0xff] }
 0x11f   : > { %v303_v48 = vsel %vm275_vm2, %v603_v47, 0.0 }
 0x120   : > { %304 = vadd.xlane.f32.xlu1 %v303_v48 }
 0x124   : > { %v605_v49 = vpop.eup %604 }
 0x125   : > { %v309_v50 = vsel %vm275_vm2, %v605_v49, 0.0 }
 0x126   : > { %310 = vadd.xlane.f32.xlu2 %v309_v50  ;;  %v502_v50 = vld [vmem:[%s168_s4] sm:$0x7] }
 0x18b   : > { %v302_v62 = vpop.xlane.xlu0 %301 }
 0x18c   : > { %606 = vrcp.f32 %v302_v62 }
 0x191   : > { %v308_v63 = vpop.xlane.xlu2 %307 }
 0x192   : > { %v607_v0 = vpop.eup %606  ;;  %608 = vrcp.f32 %v308_v63 }
 0x193   : > { %v316_v1 = vmul.f32 %v607_v0, %v599_v39  ;;  %v305_v2 = vpop.xlane.xlu1 %304 }
 0x194   : > { %610 = vrcp.f32 %v305_v2 }
 0x195   : > { %v320_v3 = vpack.c.bf16 %v316_v1, %v316_v1 }
 0x197   : > { %577 = vmatmul.msk.bf16.vlgmr.msrb.gmra.mxu0 %vm324_vm5, %v320_v3 }
 0x198   : > { %v609_v4 = vpop.eup %608 }
 0x199   : > { %v318_v5 = vmul.f32 %v609_v4, %v601_v44  ;;  %v311_v6 = vpop.xlane.xlu2 %310 }
 0x19a   : > { %v611_v7 = vpop.eup %610  ;;  %612 = vrcp.f32 %v311_v6 }
 0x19b   : > { %v317_v8 = vmul.f32 %v611_v7, %v603_v47  ;;  %v322_v9 = vpack.c.bf16 %v318_v5, %v318_v5 }
 0x19d   : > { %v321_v10 = vpack.c.bf16 %v317_v8, %v317_v8  ;;  %579 = vmatmul.msk.bf16.vlgmr.msrb.gmra.mxu2 %vm324_vm5, %v322_v9 }
 0x19f   : > { %578 = vmatmul.msk.bf16.vlgmr.msrb.gmra.mxu1 %vm324_vm5, %v321_v10 }
 0x1a0   : > { %v613_v11 = vpop.eup %612 }
 0x1a1   : > { %v319_v12 = vmul.f32 %v613_v11, %v605_v49 }
 0x1a3   : > { %v323_v13 = vpack.c.bf16 %v319_v12, %v319_v12 }
 0x1a5   : > { %580 = vmatmul.msk.bf16.vlgmr.msrb.gmra.mxu3 %vm324_vm5, %v323_v13 }
 0x214   : > { %v344_v22 = vpop.f32.mrf.mxu0 }
 0x215   : > { %v405_v23 = vpack.c.bf16 %v344_v22, %v344_v22 }
 0x217   : > { %581 = vmatmul.msk.bf16.vlgmr.msra.gmra.mxu0 %vm189_vm0, %v405_v23 }
 0x21c   : > { %v346_v24 = vpop.f32.mrf.mxu0  ;;  %v363_v25 = vpop.f32.mrf.mxu1 }
 0x21d   : > { %v406_v26 = vpack.c.bf16 %v363_v25, %v363_v25 }
 0x21f   : > { %582 = vmatmul.msk.bf16.vlgmr.msra.gmra.mxu1 %vm189_vm0, %v406_v26 }
 0x220   : > { %v382_v27 = vpop.f32.mrf.mxu2 }
 0x221   : > { %v407_v28 = vpack.c.bf16 %v382_v27, %v382_v27 }
 0x223   : > { %583 = vmatmul.msk.bf16.vlgmr.msra.gmra.mxu2 %vm189_vm0, %v407_v28 }
 0x224   : > { %v365_v29 = vpop.f32.mrf.mxu1 }
 0x228   : > { %v384_v30 = vpop.f32.mrf.mxu2  ;;  %v401_v31 = vpop.f32.mrf.mxu3 }
 0x229   : > { %v408_v32 = vpack.c.bf16 %v401_v31, %v401_v31 }
 0x22b   : > { %584 = vmatmul.msk.bf16.vlgmr.msra.gmra.mxu3 %vm189_vm0, %v408_v32 }
 0x230   : > { %v403_v33 = vpop.f32.mrf.mxu3 }
 0x294   : > { %v425_v34 = vpop.f32.mrf.mxu0 }
 0x295   : > { %v487_v40 = vsel %vm486_vm7, %v425_v34, 0.0 }
 0x29c   : > { %v427_v35 = vpop.f32.mrf.mxu0  ;;  %v444_v36 = vpop.f32.mrf.mxu1 }
 0x29d   : > { %v488_v39 = vsel %vm486_vm7, %v444_v36, 0.0 }
 0x29e   : > { %v489_v42 = vadd.f32 %v488_v39, %v487_v40 }
 0x2a4   : > { %v446_v37 = vpop.f32.mrf.mxu1 }
 0x2a6   : > { %v463_v38 = vpop.f32.mrf.mxu2 }
 0x2a7   : > { %v490_v41 = vsel %vm486_vm7, %v463_v38, 0.0 }
 0x2a8   : > { %v491_v43 = vadd.f32 %v490_v41, %v489_v42 }
 0x2ae   : > { %v465_v44 = vpop.f32.mrf.mxu2  ;;  %v482_v45 = vpop.f32.mrf.mxu3 }
 0x2af   : > { %v492_v47 = vsel %vm486_vm7, %v482_v45, 0.0 }
 0x2b0   : > { %v493_v48 = vadd.f32 %v492_v47, %v491_v43 }
 0x2b2   : > { %v497_v49 = vadd.f32 %v597_v46, %v493_v48 }
 0x2b4   : > { %v498_v51 = vpack.c.bf16 %v497_v49, %v497_v49 }
 0x2b6   : > { %v503_v52 = vsel %vm501_vm10, %v498_v51, %v502_v50  ;;  %v484_v53 = vpop.f32.mrf.mxu3 }
 0x2b7   : > { %504 = vst [vmem:[%s168_s4] sm:$0x7] %v503_v52 }
 0x2b8 PF: > { %s13_s12 = sadd.s32 1, %s620_s12  }
 0x2b9   : > { %p10_p4 = scmp.ge.s32.totalorder %s13_s12, 4  }
 0x2bb   :  { %12 = sbr.rel (!%p10_p4) target bundleno = 1 (0x1), region = 64 }

// kernel: transformer_forward.29
= control target key start
LH: loop header
LB: loop body
LE: loop exit
PB: predicated region body
PF: predicated region fallthrough
CT: control target
= control target key end

     0   :  { %vm29_vm0 = vcmask 261120   ;;  %vm33_vm1 = vcmask 254976   ;;  %v111_v12 = vmov 32.0   ;;  %vm94_vm7 = vcmask 257024   ;;  %s165_s0 = inlined_call_operand.vmem [shape: bf16[10,32], index: 0, kind: input, shape index: {}]   ;;  %s166_s1 = inlined_call_operand.vmem [shape: bf16[10,32], index: 1, kind: input, shape index: {}]   ;;  %s167_s2 = inlined_call_operand.vmem [shape: f32[1,32], index: 2, kind: input, shape index: {}]   ;;  %s168_s3 = inlined_call_operand.vmem [shape: f32[1,32], index: 3, kind: input, shape index: {}]   ;;  %s169_s4 = inlined_call_operand.vmem [shape: bf16[10,32], index: 4, kind: output, shape index: {}]  }
   0x1   :  { %v17_v0 = vld [vmem:[%s165_s0] sm:$0xf]  ;;  %v18_v2 = vld [vmem:[%s165_s0 + $0x4] sm:$0x1]  ;;  %105 = vrcp.f32 %v111_v12  ;;  %vm96_vm10 = vcmask 253952  }
   0x2   :  { %v21_v1 = vld [vmem:[%s166_s1] sm:$0xf]  ;;  %v19_v3 = vunpack.c.l.bf16 %v17_v0  ;;  %v22_v5 = vld [vmem:[%s166_s1 + $0x4] sm:$0x1]  ;;  %v20_v7 = vunpack.c.l.bf16 %v18_v2 }
   0x3   :  { %v23_v4 = vunpack.c.l.bf16 %v21_v1  ;;  %v24_v8 = vunpack.c.l.bf16 %v22_v5  ;;  %v103_v43 = vld [vmem:[%s167_s2] ss:$0 sm:$0xff] }
   0x4   :  { %v104_v46 = vld [vmem:[%s168_s3] ss:$0 sm:$0xff] }
   0x5   :  { %v25_v6 = vadd.f32 %v23_v4, %v19_v3  ;;  %v26_v10 = vadd.f32 %v24_v8, %v20_v7 }
   0x7   :  { %v30_v9 = vsel %vm29_vm0, %v25_v6, 0.0  ;;  %v34_v11 = vsel %vm33_vm1, %v26_v10, 0.0  ;;  %v106_v13 = vpop.eup %105 }
   0x8   :  { %31 = vadd.xlane.f32.xlu0 %v30_v9  ;;  %v38_v14 = vmul.f32 32.0, %v106_v13  ;;  %vm42_vm2 = vweird.f32 %v106_v13 }
   0xa   :  { %v39_v15 = vsub.f32 1.0, %v38_v14 }
   0xc   :  { %v40_v16 = vmul.f32 %v106_v13, %v39_v15 }
   0xe   :  { %v41_v17 = vadd.f32 %v106_v13, %v40_v16 }
  0x10   :  { %35 = vadd.xlane.f32.xlu0 %v34_v11  ;;  %v43_v18 = vsel %vm42_vm2, %v106_v13, %v41_v17 }
  0x7b   :  { %v32_v19 = vpop.xlane.xlu0 %31 }
  0x7c   :  { %v44_v20 = vmul.f32 %v43_v18, %v32_v19 }
  0x7e   :  { %v46_v21 = vsub.f32 %v25_v6, %v44_v20 }
  0x80   :  { %v48_v22 = vmul.f32 %v46_v21, %v46_v21 }
  0x82   :  { %v50_v23 = vsel %vm29_vm0, %v48_v22, 0.0 }
  0x83   :  { %51 = vadd.xlane.f32.xlu1 %v50_v23  ;;  %v36_v24 = vpop.xlane.xlu0 %35 }
  0x84   :  { %v45_v25 = vmul.f32 %v43_v18, %v36_v24 }
  0x86   :  { %v47_v26 = vsub.f32 %v26_v10, %v45_v25 }
  0x88   :  { %v49_v27 = vmul.f32 %v47_v26, %v47_v26 }
  0x8a   :  { %v53_v28 = vsel %vm33_vm1, %v49_v27, 0.0 }
  0x8b   :  { %54 = vadd.xlane.f32.xlu1 %v53_v28 }
  0xf6   :  { %v52_v29 = vpop.xlane.xlu1 %51 }
  0xf7   :  { %v56_v30 = vmul.f32 %v52_v29, %v43_v18 }
  0xf9   :  { %v58_v31 = vadd.f32 1e-05, %v56_v30 }
  0xfb   :  { %107 = vrsqrt.f32 %v58_v31  ;;  %vm66_vm4 = vweird.f32 %v58_v31 }
  0xfe   :  { %v55_v32 = vpop.xlane.xlu1 %54 }
  0xff   :  { %v57_v33 = vmul.f32 %v55_v32, %v43_v18 }
 0x101   :  { %v108_v34 = vpop.eup %107  ;;  %v59_v35 = vadd.f32 1e-05, %v57_v33 }
 0x102   :  { %v61_v36 = vmul.f32 %v108_v34, %v58_v31  ;;  %vm67_vm3 = vweird.f32 %v108_v34 }
 0x103   :  { %109 = vrsqrt.f32 %v59_v35  ;;  %vm68_vm5 = vmor %vm66_vm4, %vm67_vm3  ;;  %vm76_vm8 = vweird.f32 %v59_v35 }
 0x104   :  { %v62_v37 = vmul.f32 %v108_v34, %v61_v36 }
 0x106   :  { %v63_v38 = vmul.f32 0.5, %v62_v37 }
 0x108   :  { %v64_v39 = vsub.f32 1.5, %v63_v38 }
 0x109   :  { %v110_v40 = vpop.eup %109 }
 0x10a   :  { %v65_v41 = vmul.f32 %v108_v34, %v64_v39  ;;  %v71_v42 = vmul.f32 %v110_v40, %v59_v35  ;;  %vm77_vm6 = vweird.f32 %v110_v40 }
 0x10b   :  { %vm78_vm9 = vmor %vm76_vm8, %vm77_vm6 }
 0x10c   :  { %v69_v44 = vsel %vm68_vm5, %v108_v34, %v65_v41  ;;  %v72_v45 = vmul.f32 %v110_v40, %v71_v42 }
 0x10d   :  { %v80_v47 = vmul.f32 %v69_v44, %v46_v21 }
 0x10e   :  { %v73_v48 = vmul.f32 0.5, %v72_v45 }
 0x10f   :  { %v85_v49 = vmul.f32 %v103_v43, %v80_v47 }
 0x110   :  { %v74_v50 = vsub.f32 1.5, %v73_v48 }
 0x111   :  { %v90_v51 = vadd.f32 %v104_v46, %v85_v49 }
 0x112   :  { %v75_v52 = vmul.f32 %v110_v40, %v74_v50 }
 0x113   :  { %v92_v53 = vpack.c.bf16 %v90_v51, %v90_v51 }
 0x114   :  { %v79_v54 = vsel %vm78_vm9, %v110_v40, %v75_v52 }
 0x115   :  { %95 = vst.msk [vmem:[%s169_s4] sm:$0xf] %vm94_vm7, %v92_v53  ;;  %v81_v55 = vmul.f32 %v79_v54, %v47_v26 }
 0x117   :  { %v86_v56 = vmul.f32 %v103_v43, %v81_v55 }
 0x119   :  { %v91_v57 = vadd.f32 %v104_v46, %v86_v56 }
 0x11b   :  { %v93_v58 = vpack.c.bf16 %v91_v57, %v91_v57 }
 0x11d   :  { %97 = vst.msk [vmem:[%s169_s4 + $0x4] sm:$0x1] %vm96_vm10, %v93_v58 }

// kernel: transformer_forward.31
= control target key start
LH: loop header
LB: loop body
LE: loop exit
PB: predicated region body
PF: predicated region fallthrough
CT: control target
= control target key end

     0   :  { %vm42_vm0 = vcmask 261120   ;;  %vm62_vm1 = vcmask 519168   ;;  %vm64_vm2 = vcmask 516096   ;;  %s128_s1 = inlined_call_operand.vmem [shape: bf16[32,64], index: 1, kind: input, shape index: {}]   ;;  %s129_s0 = inlined_call_operand.vmem [shape: bf16[10,32], index: 0, kind: input, shape index: {}]   ;;  %s130_s2 = inlined_call_operand.vmem [shape: f32[1,64], index: 2, kind: input, shape index: {}]   ;;  %s131_s3 = inlined_call_operand.vmem [shape: bf16[10,64], index: 3, kind: output, shape index: {}]  }
   0x1   :  { %v85_v0 = vld [vmem:[%s128_s1 + $0x8] sm:$0xff]  ;;  %v84_v1 = vld [vmem:[%s128_s1] sm:$0xff] }
   0x2   :  { %52 = vmatpush.bf16.msra.mxu0 %v85_v0  ;;  %v72_v2 = vld [vmem:[%s129_s0] sm:$0xf]  ;;  %v83_v3 = vld [vmem:[%s129_s0] sm:$0x10] }
   0x3   :  { %v73_v4 = vor.u32 %v83_v3, %v72_v2  ;;  %v86_v5 = vld [vmem:[%s130_s2] ss:$0 sm:$0xff] }
   0x6   :  { %53 = vmatpush.bf16.msra.mxu0 %v84_v1 }
   0x9   :  { %82 = vmatmul.msk.bf16.vlgmr.msra.gmra.mxu0 %vm42_vm0, %v73_v4 }
  0x86   :  { %v55_v6 = vpop.f32.mrf.mxu0 }
  0x87   :  { %v56_v7 = vadd.f32 %v86_v5, %v55_v6 }
  0x89   :  { %v60_v8 = vpack.c.bf16 %v56_v7, %v56_v7 }
  0x8b   :  { %63 = vst.msk [vmem:[%s131_s3] sm:$0xf] %vm62_vm1, %v60_v8 }
  0x8e   :  { %v57_v9 = vpop.f32.mrf.mxu0 }
  0x8f   :  { %v58_v10 = vadd.f32 %v86_v5, %v57_v9 }
  0x91   :  { %v61_v11 = vpack.c.bf16 %v58_v10, %v58_v10 }
  0x93   :  { %65 = vst.msk [vmem:[%s131_s3 + $0x4] sm:$0x1] %vm64_vm2, %v61_v11 }

// kernel: transformer_forward.23
= control target key start
LH: loop header
LB: loop body
LE: loop exit
PB: predicated region body
PF: predicated region fallthrough
CT: control target
= control target key end

     0   :  { %vm48_vm0 = vcmask 261120   ;;  %vm52_vm1 = vcmask 254976   ;;  %v370_v12 = vmov 32.0   ;;  %vm294_vm13 = vcmask 257024   ;;  %s511_s0 = inlined_call_operand.vmem [shape: bf16[10,32], index: 0, kind: input, shape index: {}]   ;;  %s512_s1 = inlined_call_operand.vmem [shape: bf16[10,32], index: 1, kind: input, shape index: {}]   ;;  %s513_s2 = inlined_call_operand.vmem [shape: f32[1,32], index: 2, kind: input, shape index: {}]   ;;  %s514_s3 = inlined_call_operand.vmem [shape: f32[1,32], index: 3, kind: input, shape index: {}]   ;;  %s515_s5 = inlined_call_operand.vmem [shape: f32[1,128], index: 5, kind: input, shape index: {}]   ;;  %s516_s4 = inlined_call_operand.vmem [shape: bf16[32,128], index: 4, kind: input, shape index: {}]   ;;  %s517_s6 = inlined_call_operand.vmem [shape: bf16[128,32], index: 6, kind: input, shape index: {}]   ;;  %s518_s7 = inlined_call_operand.vmem [shape: f32[1,32], index: 7, kind: input, shape index: {}]   ;;  %s519_s8 = inlined_call_operand.vmem [shape: f32[1,32], index: 8, kind: input, shape index: {}]   ;;  %s520_s9 = inlined_call_operand.vmem [shape: f32[1,32], index: 9, kind: input, shape index: {}]   ;;  %s521_s10 = inlined_call_operand.vmem [shape: bf16[10,32], index: 10, kind: output, shape index: {}]  }
   0x1   :  { %v36_v0 = vld [vmem:[%s511_s0] sm:$0xf]  ;;  %v37_v2 = vld [vmem:[%s511_s0 + $0x4] sm:$0x1]  ;;  %360 = vrcp.f32 %v370_v12  ;;  %v344_v29 = vld [vmem:[%s516_s4 + $0x8] sm:$0xff] }
   0x2   :  { %v40_v1 = vld [vmem:[%s512_s1] sm:$0xf]  ;;  %v38_v3 = vunpack.c.l.bf16 %v36_v0  ;;  %v41_v5 = vld [vmem:[%s512_s1 + $0x4] sm:$0x1]  ;;  %v39_v7 = vunpack.c.l.bf16 %v37_v2  ;;  %141 = vmatpush.bf16.msra.mxu0 %v344_v29  ;;  %v352_v34 = vld [vmem:[%s517_s6 + $0x38] sm:$0xff] }
   0x3   :  { %v42_v4 = vunpack.c.l.bf16 %v40_v1  ;;  %v43_v8 = vunpack.c.l.bf16 %v41_v5  ;;  %v343_v31 = vld [vmem:[%s516_s4] sm:$0xff]  ;;  %220 = vmatpush.bf16.msra.mxu1 %v352_v34  ;;  %v351_v37 = vld [vmem:[%s517_s6 + $0x30] sm:$0xff]  ;;  %v350_v41 = vld [vmem:[%s517_s6 + $0x28] sm:$0xff] }
   0x4   :  { %v349_v44 = vld [vmem:[%s517_s6 + $0x20] sm:$0xff]  ;;  %v348_v0 = vld [vmem:[%s517_s6 + $0x18] sm:$0xff]  ;;  %v347_v1 = vld [vmem:[%s517_s6 + $0x10] sm:$0xff] }
   0x5   :  { %v44_v6 = vadd.f32 %v42_v4, %v38_v3  ;;  %v45_v10 = vadd.f32 %v43_v8, %v39_v7  ;;  %v354_v54 = vld [vmem:[%s513_s2] ss:$0 sm:$0xff]  ;;  %v346_v2 = vld [vmem:[%s517_s6 + $0x8] sm:$0xff] }
   0x6   :  { %142 = vmatpush.bf16.msra.mxu0 %v343_v31  ;;  %v355_v59 = vld [vmem:[%s514_s3] ss:$0 sm:$0xff] }
   0x7   :  { %v49_v9 = vsel %vm48_vm0, %v44_v6, 0.0  ;;  %v53_v11 = vsel %vm52_vm1, %v45_v10, 0.0  ;;  %v361_v13 = vpop.eup %360  ;;  %221 = vmatpush.bf16.msra.mxu1 %v351_v37  ;;  %v345_v3 = vld [vmem:[%s517_s6] sm:$0xff] }
   0x8   :  { %50 = vadd.xlane.f32.xlu0 %v49_v9  ;;  %v57_v14 = vmul.f32 32.0, %v361_v13  ;;  %vm61_vm2 = vweird.f32 %v361_v13  ;;  %v356_v5 = vld [vmem:[%s515_s5] ss:$0 sm:$0xff] }
   0x9   :  { %v357_v12 = vld [vmem:[%s518_s7] ss:$0 sm:$0xff] }
   0xa   :  { %v58_v15 = vsub.f32 1.0, %v57_v14 }
   0xb   :  { %222 = vmatpush.bf16.msra.mxu1 %v350_v41 }
   0xc   :  { %v59_v16 = vmul.f32 %v361_v13, %v58_v15 }
   0xe   :  { %v60_v17 = vadd.f32 %v361_v13, %v59_v16 }
   0xf   :  { %223 = vmatpush.bf16.msra.mxu1 %v349_v44 }
  0x10   :  { %54 = vadd.xlane.f32.xlu0 %v53_v11  ;;  %v440_v18 = vsel %vm61_vm2, %v361_v13, %v60_v17 }
  0x13   :  { %224 = vmatpush.bf16.msra.mxu1 %v348_v0 }
  0x17   :  { %225 = vmatpush.bf16.msra.mxu1 %v347_v1 }
  0x1b   :  { %226 = vmatpush.bf16.msra.mxu1 %v346_v2 }
  0x1f   :  { %227 = vmatpush.bf16.msra.mxu1 %v345_v3 }
  0x7b   :  { %v51_v19 = vpop.xlane.xlu0 %50 }
  0x7c   :  { %v63_v20 = vmul.f32 %v440_v18, %v51_v19 }
  0x7e   :  { %v65_v21 = vsub.f32 %v44_v6, %v63_v20 }
  0x80   :  { %v67_v22 = vmul.f32 %v65_v21, %v65_v21 }
  0x82   :  { %v69_v23 = vsel %vm48_vm0, %v67_v22, 0.0 }
  0x83   :  { %70 = vadd.xlane.f32.xlu1 %v69_v23  ;;  %v55_v24 = vpop.xlane.xlu0 %54 }
  0x84   :  { %v64_v25 = vmul.f32 %v440_v18, %v55_v24 }
  0x86   :  { %v66_v26 = vsub.f32 %v45_v10, %v64_v25 }
  0x88   :  { %v68_v27 = vmul.f32 %v66_v26, %v66_v26 }
  0x8a   :  { %v72_v28 = vsel %vm52_vm1, %v68_v27, 0.0 }
  0x8b   :  { %73 = vadd.xlane.f32.xlu1 %v72_v28 }
  0xf6   :  { %v71_v30 = vpop.xlane.xlu1 %70 }
  0xf7   :  { %v75_v32 = vmul.f32 %v71_v30, %v440_v18 }
  0xf9   :  { %v77_v33 = vadd.f32 1e-05, %v75_v32 }
  0xfb   :  { %362 = vrsqrt.f32 %v77_v33  ;;  %vm85_vm4 = vweird.f32 %v77_v33 }
  0xfe   :  { %v74_v35 = vpop.xlane.xlu1 %73 }
  0xff   :  { %v76_v36 = vmul.f32 %v74_v35, %v440_v18 }
 0x101   :  { %v363_v38 = vpop.eup %362  ;;  %v78_v39 = vadd.f32 1e-05, %v76_v36 }
 0x102   :  { %v80_v40 = vmul.f32 %v363_v38, %v77_v33  ;;  %vm86_vm3 = vweird.f32 %v363_v38 }
 0x103   :  { %364 = vrsqrt.f32 %v78_v39  ;;  %vm87_vm5 = vmor %vm85_vm4, %vm86_vm3  ;;  %vm95_vm7 = vweird.f32 %v78_v39 }
 0x104   :  { %v81_v42 = vmul.f32 %v363_v38, %v80_v40 }
 0x106   :  { %v82_v43 = vmul.f32 0.5, %v81_v42 }
 0x108   :  { %v83_v45 = vsub.f32 1.5, %v82_v43 }
 0x109   :  { %v365_v46 = vpop.eup %364 }
 0x10a   :  { %v84_v47 = vmul.f32 %v363_v38, %v83_v45  ;;  %v90_v48 = vmul.f32 %v365_v46, %v78_v39  ;;  %vm96_vm6 = vweird.f32 %v365_v46 }
 0x10b   :  { %vm97_vm8 = vmor %vm95_vm7, %vm96_vm6 }
 0x10c   :  { %v91_v49 = vmul.f32 %v365_v46, %v90_v48  ;;  %v88_v50 = vsel %vm87_vm5, %v363_v38, %v84_v47 }
 0x10d   :  { %v99_v53 = vmul.f32 %v88_v50, %v65_v21 }
 0x10e   :  { %v92_v51 = vmul.f32 0.5, %v91_v49 }
 0x10f   :  { %v104_v58 = vmul.f32 %v354_v54, %v99_v53 }
 0x110   :  { %v93_v52 = vsub.f32 1.5, %v92_v51 }
 0x111   :  { %v109_v61 = vadd.f32 %v355_v59, %v104_v58 }
 0x112   :  { %v94_v55 = vmul.f32 %v365_v46, %v93_v52 }
 0x114   :  { %v98_v56 = vsel %vm97_vm8, %v365_v46, %v94_v55  ;;  %v358_v46 = vld [vmem:[%s519_s8] ss:$0 sm:$0xff] }
 0x115   :  { %v100_v57 = vmul.f32 %v98_v56, %v66_v26 }
 0x117   :  { %v105_v60 = vmul.f32 %v354_v54, %v100_v57 }
 0x119   :  { %v110_v62 = vadd.f32 %v355_v59, %v105_v60 }
 0x11b   :  { %v111_v63 = vpack.c.bf16 %v110_v62, %v109_v61 }
 0x11d   :  { %310 = vmatmul.msk.bf16.vlgmr.msra.gmra.mxu0 %vm48_vm0, %v111_v63 }
 0x19a   :  { %v144_v4 = vpop.f32.mrf.mxu0 }
 0x19b   :  { %v145_v6 = vadd.f32 %v356_v5, %v144_v4 }
 0x19d   :  { %v149_v9 = vmax.f32 %v145_v6, 0.0 }
 0x1a2   :  { %v146_v7 = vpop.f32.mrf.mxu0 }
 0x1a3   :  { %v147_v8 = vadd.f32 %v356_v5, %v146_v7 }
 0x1a5   :  { %v150_v10 = vmax.f32 %v147_v8, 0.0 }
 0x1a7   :  { %v151_v11 = vpack.c.bf16 %v150_v10, %v149_v9 }
 0x1a9   :  { %228 = vmatmul.bf16.vlgmr.msra.gmra.mxu1 %v151_v11 }
 0x226   :  { %v229_v13 = vpop.f32.mrf.mxu1 }
 0x227   :  { %v230_v14 = vadd.f32 %v357_v12, %v229_v13 }
 0x229   :  { %v234_v15 = vadd.f32 %v230_v14, %v109_v61 }
 0x22b   :  { %v238_v16 = vsel %vm48_vm0, %v234_v15, 0.0 }
 0x22c   :  { %239 = vadd.xlane.f32.xlu2 %v238_v16 }
 0x22e   :  { %v231_v17 = vpop.f32.mrf.mxu1 }
 0x22f   :  { %v232_v19 = vadd.f32 %v357_v12, %v231_v17 }
 0x231   :  { %v235_v20 = vadd.f32 %v232_v19, %v110_v62 }
 0x233   :  { %v241_v21 = vsel %vm52_vm1, %v235_v20, 0.0 }
 0x234   :  { %242 = vadd.xlane.f32.xlu2 %v241_v21 }
 0x29f   :  { %v240_v22 = vpop.xlane.xlu2 %239 }
 0x2a0   :  { %v244_v23 = vmul.f32 %v240_v22, %v440_v18 }
 0x2a2   :  { %v246_v24 = vsub.f32 %v234_v15, %v244_v23 }
 0x2a4   :  { %v248_v25 = vmul.f32 %v246_v24, %v246_v24 }
 0x2a6   :  { %v250_v26 = vsel %vm48_vm0, %v248_v25, 0.0  ;;  %vm296_vm0 = vcmask 253952  }
 0x2a7   :  { %251 = vadd.xlane.f32.xlu0 %v250_v26  ;;  %v243_v27 = vpop.xlane.xlu2 %242 }
 0x2a8   :  { %v245_v28 = vmul.f32 %v243_v27, %v440_v18 }
 0x2aa   :  { %v247_v29 = vsub.f32 %v235_v20, %v245_v28 }
 0x2ac   :  { %v249_v30 = vmul.f32 %v247_v29, %v247_v29 }
 0x2ae   :  { %v253_v31 = vsel %vm52_vm1, %v249_v30, 0.0 }
 0x2af   :  { %254 = vadd.xlane.f32.xlu1 %v253_v31 }
 0x31a   :  { %v252_v32 = vpop.xlane.xlu0 %251 }
 0x31b   :  { %v256_v33 = vmul.f32 %v252_v32, %v440_v18 }
 0x31d   :  { %v258_v34 = vadd.f32 1e-05, %v256_v33 }
 0x31f   :  { %366 = vrsqrt.f32 %v258_v34  ;;  %vm266_vm10 = vweird.f32 %v258_v34 }
 0x322   :  { %v255_v35 = vpop.xlane.xlu1 %254 }
 0x323   :  { %v257_v36 = vmul.f32 %v255_v35, %v440_v18  ;;  %v359_v18 = vld [vmem:[%s520_s9] ss:$0 sm:$0xff] }
 0x325   :  { %v367_v37 = vpop.eup %366  ;;  %v259_v38 = vadd.f32 1e-05, %v257_v36 }
 0x326   :  { %v261_v39 = vmul.f32 %v367_v37, %v258_v34  ;;  %vm267_vm9 = vweird.f32 %v367_v37 }
 0x327   :  { %368 = vrsqrt.f32 %v259_v38  ;;  %vm268_vm11 = vmor %vm266_vm10, %vm267_vm9  ;;  %vm276_vm14 = vweird.f32 %v259_v38 }
 0x328   :  { %v262_v40 = vmul.f32 %v367_v37, %v261_v39 }
 0x32a   :  { %v263_v41 = vmul.f32 0.5, %v262_v40 }
 0x32c   :  { %v264_v42 = vsub.f32 1.5, %v263_v41 }
 0x32d   :  { %v369_v43 = vpop.eup %368 }
 0x32e   :  { %v265_v44 = vmul.f32 %v367_v37, %v264_v42  ;;  %v271_v45 = vmul.f32 %v369_v43, %v259_v38  ;;  %vm277_vm12 = vweird.f32 %v369_v43 }
 0x32f   :  { %vm278_vm15 = vmor %vm276_vm14, %vm277_vm12 }
 0x330   :  { %v269_v47 = vsel %vm268_vm11, %v367_v37, %v265_v44  ;;  %v272_v48 = vmul.f32 %v369_v43, %v271_v45 }
 0x331   :  { %v280_v49 = vmul.f32 %v269_v47, %v246_v24 }
 0x332   :  { %v273_v50 = vmul.f32 0.5, %v272_v48 }
 0x333   :  { %v285_v51 = vmul.f32 %v358_v46, %v280_v49 }
 0x334   :  { %v274_v52 = vsub.f32 1.5, %v273_v50 }
 0x335   :  { %v290_v53 = vadd.f32 %v359_v18, %v285_v51 }
 0x336   :  { %v275_v54 = vmul.f32 %v369_v43, %v274_v52 }
 0x337   :  { %v292_v55 = vpack.c.bf16 %v290_v53, %v290_v53 }
 0x338   :  { %v279_v56 = vsel %vm278_vm15, %v369_v43, %v275_v54 }
 0x339   :  { %295 = vst.msk [vmem:[%s521_s10] sm:$0xf] %vm294_vm13, %v292_v55  ;;  %v281_v57 = vmul.f32 %v279_v56, %v247_v29 }
 0x33b   :  { %v286_v58 = vmul.f32 %v358_v46, %v281_v57 }
 0x33d   :  { %v291_v59 = vadd.f32 %v359_v18, %v286_v58 }
 0x33f   :  { %v293_v60 = vpack.c.bf16 %v291_v59, %v291_v59 }
 0x341   :  { %297 = vst.msk [vmem:[%s521_s10 + $0x4] sm:$0x1] %vm296_vm0, %v293_v60 }

// kernel: transformer_forward.32
= control target key start
LH: loop header
LB: loop body
LE: loop exit
PB: predicated region body
PF: predicated region fallthrough
CT: control target
= control target key end

     0   :  { %s706_s15 = smov 0   ;;  %s784_s0 = inlined_call_operand.vmem [shape: bf16[2,4,5,8], index: 0, kind: input, shape index: {}]   ;;  %s785_s1 = inlined_call_operand.vmem [shape: bf16[2,2,4,5,8], index: 1, kind: input, shape index: {}]   ;;  %s786_s2 = inlined_call_operand.vmem [shape: bf16[4,8,32], index: 2, kind: input, shape index: {}]   ;;  %s787_s3 = inlined_call_operand.vmem [shape: f32[1,32], index: 3, kind: input, shape index: {}]   ;;  %s788_s4 = inlined_call_operand.vmem [shape: bf16[2,5,32], index: 4, kind: output, shape index: {}]  }
   0x1 LB: > { %s616_s16 = sadd.s32 4294967295, %s678_s15   ;;  %p620_p0 = scmp.ge.s32.totalorder %s678_s15, 1  ;;  %s678_s15 = sphi %s706_s15, %s14_s15  }
   0x2   : > { %p172_p1 = scmp.lt.s32.totalorder %s678_s15, 3 }
   0x4   : > { %p173_p2 = pnand %p620_p0, %p172_p1 }
   0x5   : > { %p202_p3 = scmp.lt.s32.totalorder (!%p173_p2), %s616_s16, 1 }
   0x6   : > { %176 = sbr.rel (%p173_p2) target bundleno = 695 (0x2b7), region = 36 }
   0xb   : > { %s790_s16 = smov (!%p202_p3, %s616_s16), 1  ;;  %vm235_vm0 = vcmask 64512   ;;  %v312_v12 = vlaneseq  ;;  %vm321_vm2 = vcmask 36864   ;;  %vm374_vm3 = vcmask 1041408  }
   0xc   : > { %s645_s17 = sshll.u32 %s790_s16, 5  ;;  %s644_s21 = sshll.u32 %s790_s16, 4  ;;  %vm375_vm4 = vcmask 1042432   ;;  %v680_v51 = vmov 65535   ;;  %vm370_vm5 = vcmask 39936   ;;  %vm458_vm6 = vcmask 1043456  }
   0xd   : > { %s720_s20 = scalar_lea.vmem %s785_s1, %s645_s17  ;;  %s206_s24 = scalar_lea.vmem %s784_s0, %s644_s21  ;;  %v313_v13 = vshrl.u32 %v312_v12, 7  ;;  %v315_v14 = vand.u32 127, %v312_v12  ;;  %v376_v52 = vsel %vm374_vm3, 4294967295, %v680_v51  ;;  %vm532_vm7 = vcmask 258048  }
   0xe   : > { %v221_v0 = vld [vmem:[%s720_s20] sm:$0x7]  ;;  %v223_v1 = vld [vmem:[%s720_s20 + $0x8] sm:$0x7]  ;;  %v224_v2 = vld [vmem:[%s720_s20 + $0xc] sm:$0x7] }
   0xf   : > { %v240_v3 = vsel %vm235_vm0, %v221_v0, 0  ;;  %v278_v4 = vsel %vm235_vm0, %v223_v1, 0  ;;  %v297_v5 = vsel %vm235_vm0, %v224_v2, 0  ;;  %v222_v6 = vld [vmem:[%s720_s20 + $0x4] sm:$0x7]  ;;  %vm316_vm1 = vcmp.le.s32.totalorder %v315_v14, %v313_v13  ;;  %s625_s7 = sshll.u32 %s790_s16, 2 }
  0x10   : > { %249 = vmatpush.bf16.xpose.msra.mxu0 %v240_v3  ;;  %287 = vmatpush.bf16.xpose.msra.mxu2 %v278_v4  ;;  %v259_v7 = vsel %vm235_vm0, %v222_v6, 0  ;;  %v217_v8 = vld [vmem:[%s206_s24] sm:$0x7]  ;;  %v219_v9 = vld [vmem:[%s206_s24 + $0x8] sm:$0x7]  ;;  %v377_v53 = vsel %vm375_vm4, %v376_v52, 0  ;;  %s215_s12 = scalar_lea.vmem %s788_s4, %s625_s7 }
  0x11   : > { %306 = vmatpush.bf16.xpose.msra.mxu3 %v297_v5  ;;  %268 = vmatpush.bf16.xpose.msra.mxu1 %v259_v7  ;;  %v220_v10 = vld [vmem:[%s206_s24 + $0xc] sm:$0x7]  ;;  %v218_v11 = vld [vmem:[%s206_s24 + $0x4] sm:$0x7]  ;;  %v626_v54 = vld [vmem:[%s720_s20 + $0x10] sm:$0x7] }
  0x12   : > { %v379_v55 = vand.u32 %v626_v54, %v377_v53  ;;  %v628_v56 = vld [vmem:[%s720_s20 + $0x18] sm:$0x7]  ;;  %v627_v58 = vld [vmem:[%s720_s20 + $0x14] sm:$0x7]  ;;  %v629_v60 = vld [vmem:[%s720_s20 + $0x1c] sm:$0x7] }
  0x13   : > { %v417_v57 = vand.u32 %v628_v56, %v377_v53  ;;  %v398_v59 = vand.u32 %v627_v58, %v377_v53  ;;  %v436_v61 = vand.u32 %v629_v60, %v377_v53  ;;  %v230_v14 = vld [vmem:[%s786_s2] sm:$0xf]  ;;  %vm545_vm8 = vcmask 256000  }
  0x14   : > { %vm546_vm9 = vsmask.f32 2304 }
  0x15   : > { %vm547_vm10 = vmand %vm545_vm8, %vm546_vm9 }
  0x17   : > { %630 = vmatmul.msk.bf16.vlgmr.msra.gmra.mxu0 %vm235_vm0, %v217_v8  ;;  %632 = vmatmul.msk.bf16.vlgmr.msra.gmra.mxu2 %vm235_vm0, %v219_v9 }
  0x18   : > { %633 = vmatmul.msk.bf16.vlgmr.msra.gmra.mxu3 %vm235_vm0, %v220_v10  ;;  %631 = vmatmul.msk.bf16.vlgmr.msra.gmra.mxu1 %vm235_vm0, %v218_v11 }
  0x19   : > { %388 = vmatpush.bf16.msrb.mxu0 %v379_v55  ;;  %426 = vmatpush.bf16.msrb.mxu2 %v417_v57 }
  0x1a   : > { %407 = vmatpush.bf16.msrb.mxu1 %v398_v59  ;;  %445 = vmatpush.bf16.msrb.mxu3 %v436_v61 }
  0x94   : > { %v251_v15 = vpop.f32.mrf.mxu0 }
  0x95   : > { %v317_v16 = vsel %vm316_vm1, %v251_v15, -1e+30  ;;  %v270_v18 = vpop.f32.mrf.mxu1  ;;  %v460_v15 = vsel %vm458_vm6, %v230_v14, 0 }
  0x96   : > { %v322_v17 = vsel %vm321_vm2, %v317_v16, -inf  ;;  %v318_v19 = vsel %vm316_vm1, %v270_v18, -1e+30  ;;  %469 = vmatpush.bf16.msra.mxu0 %v460_v15 }
  0x97   : > { %323 = vmax.xlane.f32.xlu1 %v322_v17  ;;  %v325_v24 = vsel %vm321_vm2, %v318_v19, -inf  ;;  %v233_v17 = vld [vmem:[%s786_s2 + $0xc] sm:$0xf] }
  0x9a   : > { %v289_v20 = vpop.f32.mrf.mxu2 }
  0x9b   : > { %v319_v21 = vsel %vm316_vm1, %v289_v20, -1e+30  ;;  %v308_v22 = vpop.f32.mrf.mxu3  ;;  %v231_v20 = vld [vmem:[%s786_s2 + $0x4] sm:$0xf] }
  0x9c   : > { %v328_v23 = vsel %vm321_vm2, %v319_v21, -inf  ;;  %v253_v25 = vpop.f32.mrf.mxu0  ;;  %v320_v27 = vsel %vm316_vm1, %v308_v22, -1e+30 }
  0x9d   : > { %329 = vmax.xlane.f32.xlu0 %v328_v23  ;;  %v272_v26 = vpop.f32.mrf.mxu1  ;;  %v331_v29 = vsel %vm321_vm2, %v320_v27, -inf }
  0x9f   : > { %326 = vmax.xlane.f32.xlu1 %v325_v24 }
  0xa2   : > { %v291_v28 = vpop.f32.mrf.mxu2 }
  0xa3   : > { %v310_v30 = vpop.f32.mrf.mxu3 }
  0xa5   : > { %332 = vmax.xlane.f32.xlu0 %v331_v29 }
 0x10a   : > { %v324_v31 = vpop.xlane.xlu1 %323 }
 0x10b   : > { %v334_v32 = vsub.f32 %v317_v16, %v324_v31  ;;  %v232_v16 = vld [vmem:[%s786_s2 + $0x8] sm:$0xf] }
 0x10c   : > { %v498_v18 = vsel %vm458_vm6, %v232_v16, 0 }
 0x10d   : > { %v338_v33 = vmul.f32 1.442695, %v334_v32  ;;  %507 = vmatpush.bf16.msra.mxu2 %v498_v18 }
 0x10f   : > { %656 = vpow2.f32 %v338_v33 }
 0x110   : > { %v330_v34 = vpop.xlane.xlu0 %329 }
 0x111   : > { %v336_v35 = vsub.f32 %v319_v21, %v330_v34  ;;  %v479_v21 = vsel %vm458_vm6, %v231_v20, 0 }
 0x112   : > { %v327_v36 = vpop.xlane.xlu1 %326  ;;  %488 = vmatpush.bf16.msra.mxu1 %v479_v21 }
 0x113   : > { %v342_v37 = vmul.f32 1.442695, %v336_v35  ;;  %v335_v38 = vsub.f32 %v318_v19, %v327_v36  ;;  %v517_v19 = vsel %vm458_vm6, %v233_v17, 0 }
 0x114   : > { %526 = vmatpush.bf16.msra.mxu3 %v517_v19 }
 0x115   : > { %v657_v39 = vpop.eup %656  ;;  %658 = vpow2.f32 %v342_v37  ;;  %v340_v40 = vmul.f32 1.442695, %v335_v38 }
 0x116   : > { %v346_v41 = vsel %vm321_vm2, %v657_v39, 0.0 }
 0x117   : > { %660 = vpow2.f32 %v340_v40  ;;  %347 = vadd.xlane.f32.xlu0 %v346_v41 }
 0x118   : > { %v333_v42 = vpop.xlane.xlu0 %332 }
 0x119   : > { %v337_v43 = vsub.f32 %v320_v27, %v333_v42 }
 0x11b   : > { %v659_v44 = vpop.eup %658  ;;  %v344_v45 = vmul.f32 1.442695, %v337_v43 }
 0x11c   : > { %v352_v46 = vsel %vm321_vm2, %v659_v44, 0.0 }
 0x11d   : > { %v661_v47 = vpop.eup %660  ;;  %662 = vpow2.f32 %v344_v45  ;;  %353 = vadd.xlane.f32.xlu2 %v352_v46  ;;  %v655_v46 = vld [vmem:[%s787_s3] ss:$0 sm:$0xff] }
 0x11e   : > { %v349_v48 = vsel %vm321_vm2, %v661_v47, 0.0 }
 0x11f   : > { %350 = vadd.xlane.f32.xlu1 %v349_v48 }
 0x123   : > { %v663_v49 = vpop.eup %662 }
 0x124   : > { %v355_v50 = vsel %vm321_vm2, %v663_v49, 0.0 }
 0x125   : > { %356 = vadd.xlane.f32.xlu2 %v355_v50  ;;  %v548_v50 = vld [vmem:[%s215_s12] sm:$0x7] }
 0x18a   : > { %v348_v62 = vpop.xlane.xlu0 %347 }
 0x18b   : > { %664 = vrcp.f32 %v348_v62 }
 0x190   : > { %v354_v63 = vpop.xlane.xlu2 %353 }
 0x191   : > { %v665_v0 = vpop.eup %664  ;;  %666 = vrcp.f32 %v354_v63 }
 0x192   : > { %v362_v1 = vmul.f32 %v665_v0, %v657_v39  ;;  %v351_v2 = vpop.xlane.xlu1 %350 }
 0x193   : > { %668 = vrcp.f32 %v351_v2 }
 0x194   : > { %v366_v3 = vpack.c.bf16 %v362_v1, %v362_v1 }
 0x196   : > { %634 = vmatmul.msk.bf16.vlgmr.msrb.gmra.mxu0 %vm370_vm5, %v366_v3 }
 0x197   : > { %v667_v4 = vpop.eup %666 }
 0x198   : > { %v364_v5 = vmul.f32 %v667_v4, %v659_v44  ;;  %v357_v6 = vpop.xlane.xlu2 %356 }
 0x199   : > { %v669_v7 = vpop.eup %668  ;;  %670 = vrcp.f32 %v357_v6 }
 0x19a   : > { %v363_v8 = vmul.f32 %v669_v7, %v661_v47  ;;  %v368_v9 = vpack.c.bf16 %v364_v5, %v364_v5 }
 0x19c   : > { %v367_v10 = vpack.c.bf16 %v363_v8, %v363_v8  ;;  %636 = vmatmul.msk.bf16.vlgmr.msrb.gmra.mxu2 %vm370_vm5, %v368_v9 }
 0x19e   : > { %635 = vmatmul.msk.bf16.vlgmr.msrb.gmra.mxu1 %vm370_vm5, %v367_v10 }
 0x19f   : > { %v671_v11 = vpop.eup %670 }
 0x1a0   : > { %v365_v12 = vmul.f32 %v671_v11, %v663_v49 }
 0x1a2   : > { %v369_v13 = vpack.c.bf16 %v365_v12, %v365_v12 }
 0x1a4   : > { %637 = vmatmul.msk.bf16.vlgmr.msrb.gmra.mxu3 %vm370_vm5, %v369_v13 }
 0x213   : > { %v390_v22 = vpop.f32.mrf.mxu0 }
 0x214   : > { %v451_v23 = vpack.c.bf16 %v390_v22, %v390_v22 }
 0x216   : > { %638 = vmatmul.msk.bf16.vlgmr.msra.gmra.mxu0 %vm235_vm0, %v451_v23 }
 0x21b   : > { %v392_v24 = vpop.f32.mrf.mxu0  ;;  %v409_v25 = vpop.f32.mrf.mxu1 }
 0x21c   : > { %v452_v26 = vpack.c.bf16 %v409_v25, %v409_v25 }
 0x21e   : > { %639 = vmatmul.msk.bf16.vlgmr.msra.gmra.mxu1 %vm235_vm0, %v452_v26 }
 0x21f   : > { %v428_v27 = vpop.f32.mrf.mxu2 }
 0x220   : > { %v453_v28 = vpack.c.bf16 %v428_v27, %v428_v27 }
 0x222   : > { %640 = vmatmul.msk.bf16.vlgmr.msra.gmra.mxu2 %vm235_vm0, %v453_v28 }
 0x223   : > { %v411_v29 = vpop.f32.mrf.mxu1 }
 0x227   : > { %v430_v30 = vpop.f32.mrf.mxu2  ;;  %v447_v31 = vpop.f32.mrf.mxu3 }
 0x228   : > { %v454_v32 = vpack.c.bf16 %v447_v31, %v447_v31 }
 0x22a   : > { %641 = vmatmul.msk.bf16.vlgmr.msra.gmra.mxu3 %vm235_vm0, %v454_v32 }
 0x22f   : > { %v449_v33 = vpop.f32.mrf.mxu3 }
 0x293   : > { %v471_v34 = vpop.f32.mrf.mxu0 }
 0x294   : > { %v533_v40 = vsel %vm532_vm7, %v471_v34, 0.0 }
 0x29b   : > { %v473_v35 = vpop.f32.mrf.mxu0  ;;  %v490_v36 = vpop.f32.mrf.mxu1 }
 0x29c   : > { %v534_v39 = vsel %vm532_vm7, %v490_v36, 0.0 }
 0x29d   : > { %v535_v42 = vadd.f32 %v534_v39, %v533_v40 }
 0x2a3   : > { %v492_v37 = vpop.f32.mrf.mxu1 }
 0x2a5   : > { %v509_v38 = vpop.f32.mrf.mxu2 }
 0x2a6   : > { %v536_v41 = vsel %vm532_vm7, %v509_v38, 0.0 }
 0x2a7   : > { %v537_v43 = vadd.f32 %v536_v41, %v535_v42 }
 0x2ad   : > { %v511_v44 = vpop.f32.mrf.mxu2  ;;  %v528_v45 = vpop.f32.mrf.mxu3 }
 0x2ae   : > { %v538_v47 = vsel %vm532_vm7, %v528_v45, 0.0 }
 0x2af   : > { %v539_v48 = vadd.f32 %v538_v47, %v537_v43 }
 0x2b1   : > { %v543_v49 = vadd.f32 %v655_v46, %v539_v48 }
 0x2b3   : > { %v544_v51 = vpack.c.bf16 %v543_v49, %v543_v49 }
 0x2b5   : > { %v549_v52 = vsel %vm547_vm10, %v544_v51, %v548_v50  ;;  %v530_v53 = vpop.f32.mrf.mxu3 }
 0x2b6   : > { %550 = vst [vmem:[%s215_s12] sm:$0x7] %v549_v52 }
 0x2b7 PF: > { %s14_s15 = sadd.s32 1, %s678_s15  }
 0x2b8   : > { %p11_p4 = scmp.ge.s32.totalorder %s14_s15, 4  }
 0x2ba   :  { %13 = sbr.rel (!%p11_p4) target bundleno = 1 (0x1), region = 70 }

// kernel: transformer_forward.41
= control target key start
LH: loop header
LB: loop body
LE: loop exit
PB: predicated region body
PF: predicated region fallthrough
CT: control target
= control target key end

     0   :  { %vm42_vm0 = vcmask 261120   ;;  %vm62_vm1 = vcmask 1041408   ;;  %s181_s1 = inlined_call_operand.vmem [shape: bf16[32,128], index: 1, kind: input, shape index: {}]   ;;  %s182_s0 = inlined_call_operand.vmem [shape: bf16[10,32], index: 0, kind: input, shape index: {}]   ;;  %s183_s2 = inlined_call_operand.vmem [shape: f32[1,128], index: 2, kind: input, shape index: {}]   ;;  %s184_s3 = inlined_call_operand.vmem [shape: f32[10,128], index: 3, kind: output, shape index: {}]  }
   0x1   :  { %v128_v0 = vld [vmem:[%s181_s1 + $0x8] sm:$0xff]  ;;  %v127_v1 = vld [vmem:[%s181_s1] sm:$0xff] }
   0x2   :  { %52 = vmatpush.bf16.msra.mxu0 %v128_v0  ;;  %v115_v2 = vld [vmem:[%s182_s0] sm:$0xf]  ;;  %v126_v3 = vld [vmem:[%s182_s0] sm:$0x10] }
   0x3   :  { %v116_v4 = vor.u32 %v126_v3, %v115_v2  ;;  %v129_v6 = vld [vmem:[%s183_s2] ss:$0 sm:$0xff] }
   0x6   :  { %53 = vmatpush.bf16.msra.mxu0 %v127_v1 }
   0x9   :  { %125 = vmatmul.msk.bf16.vlgmr.msra.gmra.mxu0 %vm42_vm0, %v116_v4 }
  0x86   :  { %v55_v5 = vpop.f32.mrf.mxu0 }
  0x87   :  { %v56_v10 = vadd.f32 %v129_v6, %v55_v5 }
  0x8e   :  { %v57_v7 = vpop.f32.mrf.mxu0 }
  0x8f   :  { %v58_v8 = vadd.f32 %v129_v6, %v57_v7 }
  0x91   :  { %v63_v9 = vsel %vm62_vm1, %v58_v8, -inf }
  0x92   :  { %64 = vmax.xlane.f32.xlu0 %v63_v9 }
  0x9a   :  { %60 = vmax.xlane.f32.xlu0 %v56_v10 }
 0x105   :  { %v65_v11 = vpop.xlane.xlu0 %64 }
 0x106   :  { %v67_v14 = vsub.f32 %v58_v8, %v65_v11 }
 0x108   :  { %v70_v16 = vmul.f32 1.442695, %v67_v14 }
 0x10d   :  { %v61_v12 = vpop.xlane.xlu0 %60 }
 0x10e   :  { %v66_v13 = vsub.f32 %v56_v10, %v61_v12 }
 0x110   :  { %v68_v15 = vmul.f32 1.442695, %v66_v13 }
 0x112   :  { %130 = vpow2.f32 %v68_v15 }
 0x113   :  { %132 = vpow2.f32 %v70_v16 }
 0x118   :  { %v131_v17 = vpop.eup %130 }
 0x119   :  { %72 = vadd.xlane.f32.xlu1 %v131_v17  ;;  %v133_v18 = vpop.eup %132 }
 0x11a   :  { %v74_v19 = vsel %vm62_vm1, %v133_v18, 0.0 }
 0x121   :  { %75 = vadd.xlane.f32.xlu1 %v74_v19 }
 0x18c   :  { %v73_v20 = vpop.xlane.xlu1 %72 }
 0x18d   :  { %134 = vrcp.f32 %v73_v20  ;;  %v88_v25 = vand.u32 2147483648, %v73_v20  ;;  %v86_v27 = vand.u32 2147483647, %v73_v20  ;;  %vm82_vm3 = vweird.f32 %v73_v20 }
 0x18f   :  { %v89_v30 = vor.u32 1.1754944e-38, %v88_v25  ;;  %vm87_vm5 = vcmp.eq.f32.partialorder %v86_v27, 8.507059e+37 }
 0x193   :  { %v135_v21 = vpop.eup %134 }
 0x194   :  { %v78_v22 = vmul.f32 %v135_v21, %v73_v20  ;;  %v76_v23 = vpop.xlane.xlu1 %75  ;;  %vm83_vm2 = vweird.f32 %v135_v21 }
 0x195   :  { %136 = vrcp.f32 %v76_v23  ;;  %vm84_vm4 = vmor %vm82_vm3, %vm83_vm2  ;;  %v103_v36 = vand.u32 2147483648, %v76_v23  ;;  %v101_v38 = vand.u32 2147483647, %v76_v23  ;;  %vm97_vm7 = vweird.f32 %v76_v23 }
 0x196   :  { %v79_v24 = vsub.f32 1.0, %v78_v22 }
 0x197   :  { %v104_v40 = vor.u32 1.1754944e-38, %v103_v36  ;;  %vm102_vm9 = vcmp.eq.f32.partialorder %v101_v38, 8.507059e+37 }
 0x198   :  { %v80_v26 = vmul.f32 %v135_v21, %v79_v24 }
 0x19a   :  { %v81_v28 = vadd.f32 %v135_v21, %v80_v26 }
 0x19b   :  { %v137_v29 = vpop.eup %136 }
 0x19c   :  { %v85_v31 = vsel %vm84_vm4, %v135_v21, %v81_v28  ;;  %v93_v32 = vmul.f32 %v137_v29, %v76_v23  ;;  %vm98_vm6 = vweird.f32 %v137_v29 }
 0x19d   :  { %v90_v33 = vsel %vm87_vm5, %v89_v30, %v85_v31  ;;  %vm99_vm8 = vmor %vm97_vm7, %vm98_vm6 }
 0x19e   :  { %v91_v34 = vmul.f32 %v131_v17, %v90_v33  ;;  %v94_v35 = vsub.f32 1.0, %v93_v32 }
 0x1a0   :  { %107 = vst [vmem:[%s184_s3] sm:$0xff] %v91_v34  ;;  %v95_v37 = vmul.f32 %v137_v29, %v94_v35 }
 0x1a2   :  { %v96_v39 = vadd.f32 %v137_v29, %v95_v37 }
 0x1a4   :  { %v100_v41 = vsel %vm99_vm8, %v137_v29, %v96_v39 }
 0x1a5   :  { %v105_v42 = vsel %vm102_vm9, %v104_v40, %v100_v41 }
 0x1a6   :  { %v106_v43 = vmul.f32 %v133_v18, %v105_v42 }
 0x1a8   :  { %108 = vst [vmem:[%s184_s3 + $0x8] sm:$0x3] %v106_v43 }

</bundles_post_ra>
